<compile_context>
chip_gen: v7x
topology: tpu7x:2x2x1
jax: 0.10.0
libtpu: 0.0.40
codegen_flags: <defaults>
</compile_context>

<pallas_src>
import jax
import jax.numpy as jnp
from jax.experimental import pallas as pl
from jax.experimental.pallas import tpu as pltpu


_LANE = 128
_OUT_LANES = 128  # fc3 output lane-padded 1 -> 128 so the store is an unmasked vst.
_H1, _H2 = 512, 256


def _round_up(n, m):
    return ((n + m - 1) // m) * m


def _mlp_kernel(x_ref, w1_ref, b1_ref, w2_ref, b2_ref, w3_ref, b3_ref, o_ref):
    # x arrives f32; cast to bf16 in VMEM (no extra HBM pass), f32 MXU accumulation.
    x = x_ref[...].astype(jnp.bfloat16)

    # fc1 + bias + ReLU
    h1 = jnp.dot(x, w1_ref[...], preferred_element_type=jnp.float32)
    h1 = jnp.maximum(h1 + b1_ref[...], 0.0)
    # dropout1: identity (eval mode)

    # fc2 + bias + ReLU
    h2 = jnp.dot(h1.astype(jnp.bfloat16), w2_ref[...],
                 preferred_element_type=jnp.float32)
    h2 = jnp.maximum(h2 + b2_ref[...], 0.0)
    # dropout2: identity (eval mode)

    # fc3, lane-dense: w3/b3 are zero-padded to 128 output lanes; real result in col 0.
    o = jnp.dot(h2.astype(jnp.bfloat16), w3_ref[...],
                preferred_element_type=jnp.float32)
    o_ref[...] = (o + b3_ref[...]).astype(o_ref.dtype)


def prepare_params(params):
    """One-time weight prep (hoisted out of the forward pass).

    * fc1 rows padded so the feature axis is a lane multiple (128); padded rows are 0.
    * fc3 weight/bias lane-padded from 1 -> 128 output columns.
    * Weights cast to bf16 once; biases stay f32 (added post-accumulation).
    """
    w1, b1, w2, b2, w3, b3 = params
    f = w1.shape[0]
    f_pad = _round_up(f, _LANE)
    if f_pad != f:
        w1 = jnp.pad(w1, ((0, f_pad - f), (0, 0)))
    w3p = jnp.pad(w3, ((0, 0), (0, _OUT_LANES - w3.shape[1])))
    b3p = jnp.pad(b3, ((0, 0), (0, _OUT_LANES - b3.shape[1])))
    return {
        "w1": w1.astype(jnp.bfloat16), "b1": b1.astype(jnp.float32),
        "w2": w2.astype(jnp.bfloat16), "b2": b2.astype(jnp.float32),
        "w3": w3p.astype(jnp.bfloat16), "b3": b3p.astype(jnp.float32),
        "f": f, "f_pad": f_pad,
    }


def _pick_batch_tile(b, max_tile):
    b16 = _round_up(b, 16)          # bf16 sublane packing: 16-row granularity
    if b16 <= 32:
        return b16                  # tiny batch: a single small tile
    # >=2 grid steps (shards the "parallel" axis across v7x's 2 TensorCores and keeps
    # DMA/compute overlap per core), capped at max_tile (512 amortizes per-step cost).
    return min(max_tile, _round_up(pl.cdiv(b16, 2), 16))


def simple_regression_forward(x_nchw, prepped, *, batch_tile=512,
                              out_dtype=jnp.float32):
    """x_nchw: (B, C, H, W) float32; prepped: output of prepare_params.

    Returns (B, 1) in `out_dtype` (float32 by default; bf16 halves writeback on v5e).
    """
    w1, b1 = prepped["w1"], prepped["b1"]
    w2, b2 = prepped["w2"], prepped["b2"]
    w3, b3 = prepped["w3"], prepped["b3"]
    f, f_pad = prepped["f"], prepped["f_pad"]

    b = x_nchw.shape[0]
    x2d = x_nchw.reshape(b, -1)     # stays f32; bf16 cast happens inside the kernel
    assert x2d.shape[1] == f, "input feature size does not match prepared params"
    if f_pad != f:
        x2d = jnp.pad(x2d, ((0, 0), (0, f_pad - f)))   # padded w1 rows are zero

    tb = _pick_batch_tile(b, batch_tile)
    b_pad = _round_up(b, tb)
    if b_pad != b:
        x2d = jnp.pad(x2d, ((0, b_pad - b), (0, 0)))
    grid = (b_pad // tb,)

    # Grid-invariant weights/biases: single VMEM buffer (index never changes).
    def _resident(shape):
        return pl.BlockSpec(shape, lambda i: (0, 0), pipeline_mode=pl.Buffered(1))

    # VMEM budget consistent with Buffered(1) weights + double-buffered x/out tiles.
    weight_bytes = (w1.size + w2.size + w3.size) * 2 + (b1.size + b2.size + b3.size) * 4
    tile_bytes = 2 * (tb * f_pad * 4) + 2 * (tb * _OUT_LANES * jnp.dtype(out_dtype).itemsize)
    vmem_budget = int(min(56 << 20,
                          max(16 << 20,
                              _round_up(weight_bytes + tile_bytes + (2 << 20), 1 << 20))))

    flops = 2 * b_pad * (f_pad * _H1 + _H1 * _H2 + _H2 * _OUT_LANES)
    bytes_accessed = int(x2d.size * 4 + weight_bytes
                         + b_pad * _OUT_LANES * jnp.dtype(out_dtype).itemsize)

    out = pl.pallas_call(
        _mlp_kernel,
        out_shape=jax.ShapeDtypeStruct((b_pad, _OUT_LANES), out_dtype),
        grid=grid,
        in_specs=[
            pl.BlockSpec((tb, f_pad), lambda i: (i, 0)),   # x: batch-tiled, f32
            _resident(w1.shape),
            _resident(b1.shape),
            _resident(w2.shape),
            _resident(b2.shape),
            _resident(w3.shape),
            _resident(b3.shape),
        ],
        out_specs=pl.BlockSpec((tb, _OUT_LANES), lambda i: (i, 0)),
        compiler_params=pltpu.CompilerParams(
            dimension_semantics=("parallel",),
            vmem_limit_bytes=vmem_budget,
        ),
        cost_estimate=pl.CostEstimate(
            flops=flops, transcendentals=0, bytes_accessed=bytes_accessed),
    )(x2d, w1, b1, w2, b2, w3, b3)

    # Drop batch padding and keep only the real output column.
    # (Padded rows carry ReLU(bias) garbage by design; they are discarded here.)
    return out[:b, :1]


def init_params(key, input_size):
    """Mimics torch.nn.Linear defaults (uniform +/- 1/sqrt(fan_in)).

    Weights stored already transposed as (in, out); biases as (1, out). Master copies
    are f32; the bf16/padded inference copies come from prepare_params().
    """
    def linear(k, fan_in, fan_out):
        kw, kb = jax.random.split(k)
        bound = 1.0 / jnp.sqrt(fan_in)
        w = jax.random.uniform(kw, (fan_in, fan_out), jnp.float32, -bound, bound)
        bias = jax.random.uniform(kb, (1, fan_out), jnp.float32, -bound, bound)
        return w, bias

    k1, k2, k3 = jax.random.split(key, 3)
    w1, b1 = linear(k1, input_size, _H1)
    w2, b2 = linear(k2, _H1, _H2)
    w3, b3 = linear(k3, _H2, 1)
    return (w1, b1, w2, b2, w3, b3)


def reference_forward(x_nchw, params):
    """Pure-JAX reference in the same precision regime (bf16 operands, f32 accum)."""
    w1, b1, w2, b2, w3, b3 = params
    x = x_nchw.reshape(x_nchw.shape[0], -1).astype(jnp.bfloat16)
    h1 = jnp.maximum(
        jnp.dot(x, w1.astype(jnp.bfloat16), preferred_element_type=jnp.float32) + b1, 0.0)
    h2 = jnp.maximum(
        jnp.dot(h1.astype(jnp.bfloat16), w2.astype(jnp.bfloat16),
                preferred_element_type=jnp.float32) + b2, 0.0)
    return jnp.dot(h2.astype(jnp.bfloat16), w3.astype(jnp.bfloat16),
                   preferred_element_type=jnp.float32) + b3


if __name__ == "__main__":
    key = jax.random.PRNGKey(0)
    k_x, k_p = jax.random.split(key)

    # Small NCHW input: batch=2, channels=4, spatial=16x16 -> input_size=1024
    B, C, H, W = 2, 4, 16, 16
    input_size = C * H * W
    x = jax.random.normal(k_x, (B, C, H, W), dtype=jnp.float32)

    params = init_params(k_p, input_size)
    prepped = prepare_params(params)          # one-time weight prep (hoisted)

    y = simple_regression_forward(x, prepped)
    y = jax.block_until_ready(y)

    y_ref = reference_forward(x, params)
    assert y.shape == (B, 1)
    assert jnp.allclose(y, y_ref, atol=5e-3, rtol=5e-3)

    print("KERNEL_OK")
</pallas_src>

<mosaic_0001>
module attributes {stable_mosaic.version = 11 : i64} {
  func.func @_mlp_kernel(%arg0: i32, %arg1: memref<16x1024xf32, #tpu.memory_space<vmem>>, %arg2: memref<1024x512xbf16, #tpu.memory_space<vmem>>, %arg3: memref<1x512xf32, #tpu.memory_space<vmem>>, %arg4: memref<512x256xbf16, #tpu.memory_space<vmem>>, %arg5: memref<1x256xf32, #tpu.memory_space<vmem>>, %arg6: memref<256x128xbf16, #tpu.memory_space<vmem>>, %arg7: memref<1x128xf32, #tpu.memory_space<vmem>>, %arg8: memref<16x128xf32, #tpu.memory_space<vmem>>) attributes {dimension_semantics = [#tpu.dimension_semantics<parallel>], iteration_bounds = array<i64: 1>, scalar_prefetch = 0 : i64, scratch_operands = 0 : i64, tpu.core_type = #tpu.core_type<tc>, window_params = [{transform_indices = @transform_0, window_bounds = array<i64: 16, 1024>}, {pipeline_mode = #tpu.pipeline_mode<synchronous>, transform_indices = @transform_1, window_bounds = array<i64: 1024, 512>}, {pipeline_mode = #tpu.pipeline_mode<synchronous>, transform_indices = @transform_2, window_bounds = array<i64: 1, 512>}, {pipeline_mode = #tpu.pipeline_mode<synchronous>, transform_indices = @transform_3, window_bounds = array<i64: 512, 256>}, {pipeline_mode = #tpu.pipeline_mode<synchronous>, transform_indices = @transform_4, window_bounds = array<i64: 1, 256>}, {pipeline_mode = #tpu.pipeline_mode<synchronous>, transform_indices = @transform_5, window_bounds = array<i64: 256, 128>}, {pipeline_mode = #tpu.pipeline_mode<synchronous>, transform_indices = @transform_6, window_bounds = array<i64: 1, 128>}, {transform_indices = @transform_7, window_bounds = array<i64: 16, 128>}]} {
    %c0 = arith.constant 0 : index
    %c0_0 = arith.constant 0 : index
    %0 = vector.load %arg1[%c0, %c0_0] : memref<16x1024xf32, #tpu.memory_space<vmem>>, vector<16x1024xf32>
    %1 = arith.truncf %0 : vector<16x1024xf32> to vector<16x1024xbf16>
    %c0_1 = arith.constant 0 : index
    %c0_2 = arith.constant 0 : index
    %2 = vector.load %arg2[%c0_1, %c0_2] : memref<1024x512xbf16, #tpu.memory_space<vmem>>, vector<1024x512xbf16>
    %cst = arith.constant dense<0.000000e+00> : vector<16x512xf32>
    %3 = tpu.matmul %1, %2, %cst {dimension_numbers = #tpu.dot_dimension_numbers<[1], [0], [0], [1], [0, 0, 1, 1], [], []>} : vector<16x1024xbf16>, vector<1024x512xbf16>, vector<16x512xf32> -> vector<16x512xf32>
    %c0_3 = arith.constant 0 : index
    %c0_4 = arith.constant 0 : index
    %4 = vector.load %arg3[%c0_3, %c0_4] : memref<1x512xf32, #tpu.memory_space<vmem>>, vector<1x512xf32>
    %5 = vector.broadcast %4 : vector<1x512xf32> to vector<16x512xf32>
    %6 = arith.addf %3, %5 : vector<16x512xf32>
    %cst_5 = arith.constant 0.000000e+00 : f32
    %7 = vector.broadcast %cst_5 : f32 to vector<16x512xf32>
    %8 = arith.maximumf %6, %7 : vector<16x512xf32>
    %9 = arith.truncf %8 : vector<16x512xf32> to vector<16x512xbf16>
    %c0_6 = arith.constant 0 : index
    %c0_7 = arith.constant 0 : index
    %10 = vector.load %arg4[%c0_6, %c0_7] : memref<512x256xbf16, #tpu.memory_space<vmem>>, vector<512x256xbf16>
    %cst_8 = arith.constant dense<0.000000e+00> : vector<16x256xf32>
    %11 = tpu.matmul %9, %10, %cst_8 {dimension_numbers = #tpu.dot_dimension_numbers<[1], [0], [0], [1], [0, 0, 1, 1], [], []>} : vector<16x512xbf16>, vector<512x256xbf16>, vector<16x256xf32> -> vector<16x256xf32>
    %c0_9 = arith.constant 0 : index
    %c0_10 = arith.constant 0 : index
    %12 = vector.load %arg5[%c0_9, %c0_10] : memref<1x256xf32, #tpu.memory_space<vmem>>, vector<1x256xf32>
    %13 = vector.broadcast %12 : vector<1x256xf32> to vector<16x256xf32>
    %14 = arith.addf %11, %13 : vector<16x256xf32>
    %cst_11 = arith.constant 0.000000e+00 : f32
    %15 = vector.broadcast %cst_11 : f32 to vector<16x256xf32>
    %16 = arith.maximumf %14, %15 : vector<16x256xf32>
    %17 = arith.truncf %16 : vector<16x256xf32> to vector<16x256xbf16>
    %c0_12 = arith.constant 0 : index
    %c0_13 = arith.constant 0 : index
    %18 = vector.load %arg6[%c0_12, %c0_13] : memref<256x128xbf16, #tpu.memory_space<vmem>>, vector<256x128xbf16>
    %cst_14 = arith.constant dense<0.000000e+00> : vector<16x128xf32>
    %19 = tpu.matmul %17, %18, %cst_14 {dimension_numbers = #tpu.dot_dimension_numbers<[1], [0], [0], [1], [0, 0, 1, 1], [], []>} : vector<16x256xbf16>, vector<256x128xbf16>, vector<16x128xf32> -> vector<16x128xf32>
    %c0_15 = arith.constant 0 : index
    %c0_16 = arith.constant 0 : index
    %20 = vector.load %arg7[%c0_15, %c0_16] : memref<1x128xf32, #tpu.memory_space<vmem>>, vector<1x128xf32>
    %21 = vector.broadcast %20 : vector<1x128xf32> to vector<16x128xf32>
    %22 = arith.addf %19, %21 : vector<16x128xf32>
    %c0_17 = arith.constant 0 : index
    %c0_18 = arith.constant 0 : index
    %23 = vector.load %arg8[%c0_17, %c0_18] : memref<16x128xf32, #tpu.memory_space<vmem>>, vector<16x128xf32>
    tpu.vector_store %arg8[%c0_17, %c0_18], %22 {strides = array<i32>} : memref<16x128xf32, #tpu.memory_space<vmem>>, vector<16x128xf32>,
    return
  }
  func.func @transform_0(%arg0: i32) -> (i32, i32) {
    %c0_i32 = arith.constant 0 : i32
    %c0_i32_0 = arith.constant 0 : i32
    return %arg0, %c0_i32 : i32, i32
  }
  func.func @transform_1(%arg0: i32) -> (i32, i32) {
    %c0_i32 = arith.constant 0 : i32
    %c0_i32_0 = arith.constant 0 : i32
    %c0_i32_1 = arith.constant 0 : i32
    return %c0_i32, %c0_i32_0 : i32, i32
  }
  func.func @transform_2(%arg0: i32) -> (i32, i32) {
    %c0_i32 = arith.constant 0 : i32
    %c0_i32_0 = arith.constant 0 : i32
    %c0_i32_1 = arith.constant 0 : i32
    return %c0_i32, %c0_i32_0 : i32, i32
  }
  func.func @transform_3(%arg0: i32) -> (i32, i32) {
    %c0_i32 = arith.constant 0 : i32
    %c0_i32_0 = arith.constant 0 : i32
    %c0_i32_1 = arith.constant 0 : i32
    return %c0_i32, %c0_i32_0 : i32, i32
  }
  func.func @transform_4(%arg0: i32) -> (i32, i32) {
    %c0_i32 = arith.constant 0 : i32
    %c0_i32_0 = arith.constant 0 : i32
    %c0_i32_1 = arith.constant 0 : i32
    return %c0_i32, %c0_i32_0 : i32, i32
  }
  func.func @transform_5(%arg0: i32) -> (i32, i32) {
    %c0_i32 = arith.constant 0 : i32
    %c0_i32_0 = arith.constant 0 : i32
    %c0_i32_1 = arith.constant 0 : i32
    return %c0_i32, %c0_i32_0 : i32, i32
  }
  func.func @transform_6(%arg0: i32) -> (i32, i32) {
    %c0_i32 = arith.constant 0 : i32
    %c0_i32_0 = arith.constant 0 : i32
    %c0_i32_1 = arith.constant 0 : i32
    return %c0_i32, %c0_i32_0 : i32, i32
  }
  func.func @transform_7(%arg0: i32) -> (i32, i32) {
    %c0_i32 = arith.constant 0 : i32
    %c0_i32_0 = arith.constant 0 : i32
    return %arg0, %c0_i32 : i32, i32
  }
}

</mosaic_0001>

<bundles_post_ra>
// kernel: tpu_custom_call.1
= control target key start
LH: loop header
LB: loop body
LE: loop exit
PB: predicated region body
PF: predicated region fallthrough
CT: control target
= control target key end

     0   :  { %12 = vsyncpa [#allocation3], 0  ;;  %s3913_s0 = inlined_call_operand.hbm [shape: f32[16,1024], index: 0, kind: input, shape index: {}]   ;;  %s3914_s1 = inlined_call_operand.hbm [shape: bf16[1024,512], index: 1, kind: input, shape index: {}]   ;;  %s3915_s2 = inlined_call_operand.vmem [shape: f32[1,512], index: 2, kind: input, shape index: {}]   ;;  %s3916_s3 = inlined_call_operand.hbm [shape: bf16[512,256], index: 3, kind: input, shape index: {}]   ;;  %s3917_s4 = inlined_call_operand.vmem [shape: f32[1,256], index: 4, kind: input, shape index: {}]   ;;  %s3918_s5 = inlined_call_operand.hbm [shape: bf16[256,128], index: 5, kind: input, shape index: {}]   ;;  %s3919_s6 = inlined_call_operand.vmem [shape: f32[1,128], index: 6, kind: input, shape index: {}]   ;;  %s3920_s7 = inlined_call_operand.hbm [shape: f32[16,128], index: 7, kind: output, shape index: {}]  }
   0x1   :  { %13 = vsyncpa [#allocation6], 0 }
   0x2   :  { %14 = vsyncpa [#allocation9], 0 }
   0x3   :  { %15 = vsyncpa [#allocation4], 0  ;;  %s3731_s24 = smov [#allocation5]   ;;  %s3613_s28 = scalar_lea.hbm %s3914_s1, 32768 }
   0x4   :  { %s33_s25 = sshll.u32 %s3731_s24, 4  ;;  %p3614_p0 = scmp.ne.s32.totalorder %s3914_s1, %s3613_s28  ;;  %s34_s25 = int_to_ptr.vmem [resolvable:$true] %s33_s25 }
   0x5   :  { %p3617_p1 = scmp.lt.u32.totalorder %s3613_s28, %s3914_s1 }
   0x7   :  { %p3619_p2 = pnand %p3617_p1, %p3614_p0 }
   0x9   :  { %3622 = shalt.err (!%p3619_p2)
}
   0xa   :  { %s3623_s10 = scalar_lea.vmem %s34_s25, 32768  ;;  %p3628_p4 = scmp.lt.s32.totalorder %s34_s25, %s34_s25 }
   0xb   :  { %p3624_p3 = scmp.ne.s32.totalorder %s34_s25, %s3623_s10  ;;  %p3629_p5 = scmp.lt.s32.totalorder %s3623_s10, %s3623_s10 }
   0xd   :  { %p3630_p6 = por %p3629_p5, %p3628_p4 }
   0xf   :  { %p3631_p7 = pnand %p3630_p6, %p3624_p3 }
  0x11   :  { %3634 = shalt.err (!%p3631_p7)
}
  0x12   :  { %s3732_s11 = smov 256   ;;  %s3733_s12 = smov 16  }
  0x13   :  { %39 = dma.hbm_to_vmem [thread:$0]  %s3914_s1, 32768, %s34_s25, [#allocation6], %s3732_s11, %s3732_s11, %s3733_s12  }
  0x14   :  { %s3734_s15 = smov [#allocation2]   ;;  %s3635_s19 = scalar_lea.hbm %s3913_s0, 2048 }
  0x15   :  { %s21_s16 = sshll.u32 %s3734_s15, 4  ;;  %p3636_p8 = scmp.ne.s32.totalorder %s3913_s0, %s3635_s19  ;;  %s22_s16 = int_to_ptr.vmem [resolvable:$true] %s21_s16 }
  0x16   :  { %p3639_p9 = scmp.lt.u32.totalorder %s3635_s19, %s3913_s0 }
  0x18   :  { %p3641_p10 = pnand %p3639_p9, %p3636_p8 }
  0x1a   :  { %3644 = shalt.err (!%p3641_p10)
}
  0x1b   :  { %s3645_s24 = scalar_lea.vmem %s22_s16, 2048  ;;  %p3650_p12 = scmp.lt.s32.totalorder %s22_s16, %s22_s16 }
  0x1c   :  { %p3646_p11 = scmp.ne.s32.totalorder %s22_s16, %s3645_s24  ;;  %p3651_p13 = scmp.lt.s32.totalorder %s3645_s24, %s3645_s24 }
  0x1e   :  { %p3652_p0 = por %p3651_p13, %p3650_p12 }
  0x20   :  { %p3653_p1 = pnand %p3652_p0, %p3646_p11 }
  0x22   :  { %3656 = shalt.err (!%p3653_p1)
}
  0x23   :  { %s3735_s1 = smov 1024   ;;  %s3736_s25 = smov 64  }
  0x24   :  { %27 = dma.hbm_to_vmem [thread:$0]  %s3913_s0, 2048, %s22_s16, [#allocation3], %s3735_s1, %s3735_s1, %s3736_s25  }
  0x25   :  { %s3737_s28 = smov [#allocation7]   ;;  %s3657_s9 = scalar_lea.hbm %s3916_s3, 8192 }
  0x26   :  { %s47_s29 = sshll.u32 %s3737_s28, 4  ;;  %p3658_p2 = scmp.ne.s32.totalorder %s3916_s3, %s3657_s9  ;;  %s48_s29 = int_to_ptr.vmem [resolvable:$true] %s47_s29 }
  0x27   :  { %p3661_p3 = scmp.lt.u32.totalorder %s3657_s9, %s3916_s3 }
  0x29   :  { %p3663_p4 = pnand %p3661_p3, %p3658_p2 }
  0x2b   :  { %3666 = shalt.err (!%p3663_p4)
}
  0x2c   :  { %s3667_s14 = scalar_lea.vmem %s48_s29, 8192  ;;  %p3672_p6 = scmp.lt.s32.totalorder %s48_s29, %s48_s29 }
  0x2d   :  { %p3668_p5 = scmp.ne.s32.totalorder %s48_s29, %s3667_s14  ;;  %p3673_p7 = scmp.lt.s32.totalorder %s3667_s14, %s3667_s14 }
  0x2f   :  { %p3674_p8 = por %p3673_p7, %p3672_p6 }
  0x31   :  { %p3675_p9 = pnand %p3674_p8, %p3668_p5 }
  0x33   :  { %3678 = shalt.err (!%p3675_p9)
}
  0x34   :  { %s3738_s0 = smov 128   ;;  %s3739_s15 = smov 8  }
  0x35   :  { %53 = dma.hbm_to_vmem [thread:$0]  %s3916_s3, 8192, %s48_s29, [#allocation6], %s3738_s0, %s3738_s0, %s3739_s15  }
  0x36   :  { %s3740_s18 = smov [#allocation8]   ;;  %s3679_s22 = scalar_lea.hbm %s3918_s5, 2048 }
  0x37   :  { %s61_s19 = sshll.u32 %s3740_s18, 4  ;;  %p3680_p10 = scmp.ne.s32.totalorder %s3918_s5, %s3679_s22  ;;  %s62_s19 = int_to_ptr.vmem [resolvable:$true] %s61_s19 }
  0x38   :  { %p3683_p11 = scmp.lt.u32.totalorder %s3679_s22, %s3918_s5 }
  0x3a   :  { %p3685_p12 = pnand %p3683_p11, %p3680_p10 }
  0x3c   :  { %3688 = shalt.err (!%p3685_p12)
}
  0x3d   :  { %s3689_s27 = scalar_lea.vmem %s62_s19, 2048  ;;  %p3694_p0 = scmp.lt.s32.totalorder %s62_s19, %s62_s19 }
  0x3e   :  { %p3690_p13 = scmp.ne.s32.totalorder %s62_s19, %s3689_s27  ;;  %p3695_p1 = scmp.lt.s32.totalorder %s3689_s27, %s3689_s27 }
  0x40   :  { %p3696_p2 = por %p3695_p1, %p3694_p0 }
  0x42   :  { %p3697_p3 = pnand %p3696_p2, %p3690_p13 }
  0x44   :  { %3700 = shalt.err (!%p3697_p3)
}
  0x45   :  { %s3741_s3 = smov 4  }
  0x46   :  { %67 = dma.hbm_to_vmem [thread:$0]  %s3918_s5, 2048, %s62_s19, [#allocation9], %s3736_s25, %s3736_s25, %s3741_s3  }
  0x47   :  { %3723 = dma.done.wait [#allocation3], 2048  }
  0x48   :  { %3724 = vsyncadd [#allocation3], 4294965248 }
  0x49   :  { %3725 = dma.done.wait [#allocation6], 40960  }
  0x4a   :  { %3726 = vsyncadd [#allocation6], 4294926336 }
  0x4b   :  { %3727 = dma.done.wait [#allocation9], 2048  }
  0x4c   :  { %3728 = vsyncadd [#allocation9], 4294965248  ;;  %v3117_v0 = vld [vmem:[#allocation5 + $0x4] ss:$16 sps:$4 sm:$0xff]   ;;  %v3121_v2 = vld [vmem:[#allocation5] ss:$16 sps:$4 sm:$0xff]  }
  0x4d   :  { %v3119_v1 = vld [vmem:[#allocation5 + $0x204] ss:$16 sps:$4 sm:$0xff]   ;;  %1665 = vmatprep.subr.bf16.mxu1 %v3117_v0  ;;  %v3122_v3 = vld [vmem:[#allocation5 + $0x200] ss:$16 sps:$4 sm:$0xff]   ;;  %v84_v46 = vld [vmem:[#allocation2 + $0x8] sm:$0xff]  ;;  %s3742_s9 = smov [#allocation10]  }
  0x4e   :  { %1708 = vmatprep.subr.bf16.mxu0 %v3119_v1  ;;  %v3123_v4 = vld [vmem:[#allocation5 + $0x24] ss:$16 sps:$4 sm:$0xff]   ;;  %1666 = vmatpush1.bf16.msra.mxu1 %v3121_v2  ;;  %v3127_v6 = vld [vmem:[#allocation5 + $0x20] ss:$16 sps:$4 sm:$0xff]   ;;  %v92_v49 = vld [vmem:[#allocation2 + $0x48] sm:$0xff]  ;;  %s2692_s10 = sshll.u32 %s3742_s9, 4  ;;  %s2693_s10 = int_to_ptr.vmem [resolvable:$true] %s2692_s10 }
  0x4f   :  { %1709 = vmatpush1.bf16.msra.mxu0 %v3122_v3  ;;  %v3125_v5 = vld [vmem:[#allocation5 + $0x224] ss:$16 sps:$4 sm:$0xff]   ;;  %1667 = vmatprep.subr.bf16.mxu1 %v3123_v4  ;;  %v3128_v7 = vld [vmem:[#allocation5 + $0x220] ss:$16 sps:$4 sm:$0xff]   ;;  %v3837_v50 = vpack.c.bf16 %v92_v49, %v84_v46  ;;  %v86_v51 = vld [vmem:[#allocation2 + $0x18] sm:$0xff]  ;;  %s3701_s11 = scalar_lea.vmem %s2693_s10, 256  ;;  %p3706_p5 = scmp.lt.s32.totalorder %s2693_s10, %s2693_s10 }
  0x50   :  { %1710 = vmatprep.subr.bf16.mxu0 %v3125_v5  ;;  %v3129_v8 = vld [vmem:[#allocation5 + $0x44] ss:$16 sps:$4 sm:$0xff]   ;;  %v3133_v10 = vld [vmem:[#allocation5 + $0x40] ss:$16 sps:$4 sm:$0xff]   ;;  %v94_v52 = vld [vmem:[#allocation2 + $0x58] sm:$0xff]  ;;  %p3702_p4 = scmp.ne.s32.totalorder %s2693_s10, %s3701_s11  ;;  %p3707_p6 = scmp.lt.s32.totalorder %s3701_s11, %s3701_s11 }
  0x51   :  { %v3131_v9 = vld [vmem:[#allocation5 + $0x244] ss:$16 sps:$4 sm:$0xff]   ;;  %v3134_v11 = vld [vmem:[#allocation5 + $0x240] ss:$16 sps:$4 sm:$0xff]   ;;  %v3839_v55 = vpack.c.bf16 %v94_v52, %v86_v51  ;;  %1697 = vmatprep.mubr.bf16.mxu1 %v3837_v50  ;;  %v3258_v46 = vld [vmem:[#allocation5 + $0xe8] ss:$16 sps:$4 sm:$0xff]  }
  0x52   :  { %1668 = vmatpush1.bf16.msra.mxu1 %v3127_v6  ;;  %v3135_v12 = vld [vmem:[#allocation5 + $0x64] ss:$16 sps:$4 sm:$0xff]   ;;  %v3139_v14 = vld [vmem:[#allocation5 + $0x60] ss:$16 sps:$4 sm:$0xff]   ;;  %v3272_v52 = vld [vmem:[#allocation5 + $0x12c] ss:$16 sps:$4 sm:$0xff]   ;;  %p3708_p7 = por %p3707_p6, %p3706_p5 }
  0x53   :  { %1711 = vmatpush1.bf16.msra.mxu0 %v3128_v7  ;;  %1669 = vmatprep.subr.bf16.mxu1 %v3129_v8  ;;  %v3137_v13 = vld [vmem:[#allocation5 + $0x264] ss:$16 sps:$4 sm:$0xff]   ;;  %v3140_v15 = vld [vmem:[#allocation5 + $0x260] ss:$16 sps:$4 sm:$0xff]  }
  0x54   :  { %1712 = vmatprep.subr.bf16.mxu0 %v3131_v9  ;;  %v3141_v16 = vld [vmem:[#allocation5 + $0x84] ss:$16 sps:$4 sm:$0xff]   ;;  %v3145_v18 = vld [vmem:[#allocation5 + $0x80] ss:$16 sps:$4 sm:$0xff]   ;;  %1740 = vmatprep.mubr.bf16.mxu0 %v3839_v55  ;;  %p3709_p8 = pnand %p3708_p7, %p3702_p4 }
  0x55   :  { %v3143_v17 = vld [vmem:[#allocation5 + $0x284] ss:$16 sps:$4 sm:$0xff]   ;;  %v3146_v19 = vld [vmem:[#allocation5 + $0x280] ss:$16 sps:$4 sm:$0xff]  }
  0x56   :  { %1670 = vmatpush1.bf16.msra.mxu1 %v3133_v10  ;;  %v3147_v20 = vld [vmem:[#allocation5 + $0xa4] ss:$16 sps:$4 sm:$0xff]   ;;  %v3151_v22 = vld [vmem:[#allocation5 + $0xa0] ss:$16 sps:$4 sm:$0xff]  }
  0x57   :  { %1713 = vmatpush1.bf16.msra.mxu0 %v3134_v11  ;;  %1671 = vmatprep.subr.bf16.mxu1 %v3135_v12  ;;  %v3149_v21 = vld [vmem:[#allocation5 + $0x2a4] ss:$16 sps:$4 sm:$0xff]   ;;  %v3152_v23 = vld [vmem:[#allocation5 + $0x2a0] ss:$16 sps:$4 sm:$0xff]   ;;  %v3218_v11 = vld [vmem:[#allocation5 + $0xc] ss:$16 sps:$4 sm:$0xff]  }
  0x58   :  { %1714 = vmatprep.subr.bf16.mxu0 %v3137_v13  ;;  %v3153_v24 = vld [vmem:[#allocation5 + $0xc4] ss:$16 sps:$4 sm:$0xff]   ;;  %v3157_v26 = vld [vmem:[#allocation5 + $0xc0] ss:$16 sps:$4 sm:$0xff]  }
  0x59   :  { %v3155_v25 = vld [vmem:[#allocation5 + $0x2c4] ss:$16 sps:$4 sm:$0xff]   ;;  %v3158_v27 = vld [vmem:[#allocation5 + $0x2c0] ss:$16 sps:$4 sm:$0xff]  }
  0x5a   :  { %1672 = vmatpush1.bf16.msra.mxu1 %v3139_v14  ;;  %v3159_v28 = vld [vmem:[#allocation5 + $0xe4] ss:$16 sps:$4 sm:$0xff]   ;;  %v3163_v30 = vld [vmem:[#allocation5 + $0xe0] ss:$16 sps:$4 sm:$0xff]   ;;  %v3216_v14 = vld [vmem:[#allocation5 + $0x8] ss:$16 sps:$4 sm:$0xff]  }
  0x5b   :  { %1715 = vmatpush1.bf16.msra.mxu0 %v3140_v15  ;;  %1673 = vmatprep.subr.bf16.mxu1 %v3141_v16  ;;  %v3161_v29 = vld [vmem:[#allocation5 + $0x2e4] ss:$16 sps:$4 sm:$0xff]   ;;  %v3164_v31 = vld [vmem:[#allocation5 + $0x2e0] ss:$16 sps:$4 sm:$0xff]  }
  0x5c   :  { %1716 = vmatprep.subr.bf16.mxu0 %v3143_v17  ;;  %v3165_v32 = vld [vmem:[#allocation5 + $0x104] ss:$16 sps:$4 sm:$0xff]   ;;  %v3169_v34 = vld [vmem:[#allocation5 + $0x100] ss:$16 sps:$4 sm:$0xff]   ;;  %v3224_v17 = vld [vmem:[#allocation5 + $0x2c] ss:$16 sps:$4 sm:$0xff]  }
  0x5d   :  { %v3167_v33 = vld [vmem:[#allocation5 + $0x304] ss:$16 sps:$4 sm:$0xff]   ;;  %v3170_v35 = vld [vmem:[#allocation5 + $0x300] ss:$16 sps:$4 sm:$0xff]  }
  0x5e   :  { %1674 = vmatpush1.bf16.msra.mxu1 %v3145_v18  ;;  %v3171_v36 = vld [vmem:[#allocation5 + $0x124] ss:$16 sps:$4 sm:$0xff]   ;;  %v3175_v38 = vld [vmem:[#allocation5 + $0x120] ss:$16 sps:$4 sm:$0xff]  }
  0x5f   :  { %1717 = vmatpush1.bf16.msra.mxu0 %v3146_v19  ;;  %1675 = vmatprep.subr.bf16.mxu1 %v3147_v20  ;;  %v3173_v37 = vld [vmem:[#allocation5 + $0x324] ss:$16 sps:$4 sm:$0xff]   ;;  %v3176_v39 = vld [vmem:[#allocation5 + $0x320] ss:$16 sps:$4 sm:$0xff]   ;;  %v3222_v19 = vld [vmem:[#allocation5 + $0x28] ss:$16 sps:$4 sm:$0xff]  }
  0x60   :  { %1718 = vmatprep.subr.bf16.mxu0 %v3149_v21  ;;  %v3177_v40 = vld [vmem:[#allocation5 + $0x144] ss:$16 sps:$4 sm:$0xff]   ;;  %v3181_v42 = vld [vmem:[#allocation5 + $0x140] ss:$16 sps:$4 sm:$0xff]   ;;  %v3230_v21 = vld [vmem:[#allocation5 + $0x4c] ss:$16 sps:$4 sm:$0xff]  }
  0x61   :  { %v3179_v41 = vld [vmem:[#allocation5 + $0x344] ss:$16 sps:$4 sm:$0xff]   ;;  %v3182_v43 = vld [vmem:[#allocation5 + $0x340] ss:$16 sps:$4 sm:$0xff]  }
  0x62   :  { %1676 = vmatpush1.bf16.msra.mxu1 %v3151_v22  ;;  %v3183_v44 = vld [vmem:[#allocation5 + $0x164] ss:$16 sps:$4 sm:$0xff]   ;;  %v3187_v47 = vld [vmem:[#allocation5 + $0x160] ss:$16 sps:$4 sm:$0xff]  }
  0x63   :  { %1719 = vmatpush1.bf16.msra.mxu0 %v3152_v23  ;;  %1677 = vmatprep.subr.bf16.mxu1 %v3153_v24  ;;  %v3185_v45 = vld [vmem:[#allocation5 + $0x364] ss:$16 sps:$4 sm:$0xff]   ;;  %v3188_v48 = vld [vmem:[#allocation5 + $0x360] ss:$16 sps:$4 sm:$0xff]   ;;  %v3228_v23 = vld [vmem:[#allocation5 + $0x48] ss:$16 sps:$4 sm:$0xff]  }
  0x64   :  { %1720 = vmatprep.subr.bf16.mxu0 %v3155_v25  ;;  %v3189_v53 = vld [vmem:[#allocation5 + $0x184] ss:$16 sps:$4 sm:$0xff]   ;;  %v3193_v56 = vld [vmem:[#allocation5 + $0x180] ss:$16 sps:$4 sm:$0xff]   ;;  %v3236_v25 = vld [vmem:[#allocation5 + $0x6c] ss:$16 sps:$4 sm:$0xff]  }
  0x65   :  { %v3191_v54 = vld [vmem:[#allocation5 + $0x384] ss:$16 sps:$4 sm:$0xff]   ;;  %v3194_v57 = vld [vmem:[#allocation5 + $0x380] ss:$16 sps:$4 sm:$0xff]  }
  0x66   :  { %1678 = vmatpush1.bf16.msra.mxu1 %v3157_v26  ;;  %v3195_v58 = vld [vmem:[#allocation5 + $0x1a4] ss:$16 sps:$4 sm:$0xff]   ;;  %v3199_v60 = vld [vmem:[#allocation5 + $0x1a0] ss:$16 sps:$4 sm:$0xff]  }
  0x67   :  { %1721 = vmatpush1.bf16.msra.mxu0 %v3158_v27  ;;  %1679 = vmatprep.subr.bf16.mxu1 %v3159_v28  ;;  %v3197_v59 = vld [vmem:[#allocation5 + $0x3a4] ss:$16 sps:$4 sm:$0xff]   ;;  %v3200_v61 = vld [vmem:[#allocation5 + $0x3a0] ss:$16 sps:$4 sm:$0xff]   ;;  %v3234_v27 = vld [vmem:[#allocation5 + $0x68] ss:$16 sps:$4 sm:$0xff]  }
  0x68   :  { %1722 = vmatprep.subr.bf16.mxu0 %v3161_v29  ;;  %v3201_v62 = vld [vmem:[#allocation5 + $0x1c4] ss:$16 sps:$4 sm:$0xff]   ;;  %v3205_v0 = vld [vmem:[#allocation5 + $0x1c0] ss:$16 sps:$4 sm:$0xff]   ;;  %v3242_v29 = vld [vmem:[#allocation5 + $0x8c] ss:$16 sps:$4 sm:$0xff]  }
  0x69   :  { %v3203_v63 = vld [vmem:[#allocation5 + $0x3c4] ss:$16 sps:$4 sm:$0xff]   ;;  %v3206_v1 = vld [vmem:[#allocation5 + $0x3c0] ss:$16 sps:$4 sm:$0xff]  }
  0x6a   :  { %1680 = vmatpush1.bf16.msra.mxu1 %v3163_v30  ;;  %v3207_v2 = vld [vmem:[#allocation5 + $0x1e4] ss:$16 sps:$4 sm:$0xff]   ;;  %v3211_v4 = vld [vmem:[#allocation5 + $0x1e0] ss:$16 sps:$4 sm:$0xff]  }
  0x6b   :  { %1723 = vmatpush1.bf16.msra.mxu0 %v3164_v31  ;;  %1681 = vmatprep.subr.bf16.mxu1 %v3165_v32  ;;  %v3209_v3 = vld [vmem:[#allocation5 + $0x3e4] ss:$16 sps:$4 sm:$0xff]   ;;  %v3212_v5 = vld [vmem:[#allocation5 + $0x3e0] ss:$16 sps:$4 sm:$0xff]   ;;  %v3240_v31 = vld [vmem:[#allocation5 + $0x88] ss:$16 sps:$4 sm:$0xff]  }
  0x6c   :  { %1724 = vmatprep.subr.bf16.mxu0 %v3167_v33  ;;  %v83_v6 = vld [vmem:[#allocation2] sm:$0xff]  ;;  %v85_v9 = vld [vmem:[#allocation2 + $0x10] sm:$0xff]  ;;  %v3248_v33 = vld [vmem:[#allocation5 + $0xac] ss:$16 sps:$4 sm:$0xff]  }
  0x6d   :  { %v91_v7 = vld [vmem:[#allocation2 + $0x40] sm:$0xff]  ;;  %v93_v10 = vld [vmem:[#allocation2 + $0x50] sm:$0xff] }
  0x6e   :  { %1682 = vmatpush1.bf16.msra.mxu1 %v3169_v34  ;;  %v3215_v8 = vld [vmem:[#allocation5 + $0x404] ss:$16 sps:$4 sm:$0xff]   ;;  %v3843_v12 = vpack.c.bf16 %v91_v7, %v83_v6  ;;  %v3213_v13 = vld [vmem:[#allocation5 + $0x400] ss:$16 sps:$4 sm:$0xff]   ;;  %v3845_v15 = vpack.c.bf16 %v93_v10, %v85_v9  ;;  %v3294_v7 = vld [vmem:[#allocation5 + $0x1a8] ss:$16 sps:$4 sm:$0xff]  }
  0x6f   :  { %1725 = vmatpush1.bf16.msra.mxu0 %v3170_v35  ;;  %1683 = vmatprep.subr.bf16.mxu1 %v3171_v36  ;;  %v3221_v16 = vld [vmem:[#allocation5 + $0x424] ss:$16 sps:$4 sm:$0xff]   ;;  %v3219_v18 = vld [vmem:[#allocation5 + $0x420] ss:$16 sps:$4 sm:$0xff]   ;;  %v3246_v35 = vld [vmem:[#allocation5 + $0xa8] ss:$16 sps:$4 sm:$0xff]  }
  0x70   :  { %1726 = vmatprep.subr.bf16.mxu0 %v3173_v37  ;;  %v3227_v20 = vld [vmem:[#allocation5 + $0x444] ss:$16 sps:$4 sm:$0xff]   ;;  %v3225_v22 = vld [vmem:[#allocation5 + $0x440] ss:$16 sps:$4 sm:$0xff]   ;;  %v3254_v37 = vld [vmem:[#allocation5 + $0xcc] ss:$16 sps:$4 sm:$0xff]  }
  0x71   :  { %v3233_v24 = vld [vmem:[#allocation5 + $0x464] ss:$16 sps:$4 sm:$0xff]   ;;  %v3231_v26 = vld [vmem:[#allocation5 + $0x460] ss:$16 sps:$4 sm:$0xff]   ;;  %v3302_v9 = vld [vmem:[#allocation5 + $0x1cc] ss:$16 sps:$4 sm:$0xff]  }
  0x72   :  { %1684 = vmatpush1.bf16.msra.mxu1 %v3175_v38  ;;  %v3239_v28 = vld [vmem:[#allocation5 + $0x484] ss:$16 sps:$4 sm:$0xff]   ;;  %v3237_v30 = vld [vmem:[#allocation5 + $0x480] ss:$16 sps:$4 sm:$0xff]  }
  0x73   :  { %1727 = vmatpush1.bf16.msra.mxu0 %v3176_v39  ;;  %1685 = vmatprep.subr.bf16.mxu1 %v3177_v40  ;;  %v3245_v32 = vld [vmem:[#allocation5 + $0x4a4] ss:$16 sps:$4 sm:$0xff]   ;;  %v3243_v34 = vld [vmem:[#allocation5 + $0x4a0] ss:$16 sps:$4 sm:$0xff]   ;;  %v3252_v39 = vld [vmem:[#allocation5 + $0xc8] ss:$16 sps:$4 sm:$0xff]  }
  0x74   :  { %1728 = vmatprep.subr.bf16.mxu0 %v3179_v41  ;;  %v3251_v36 = vld [vmem:[#allocation5 + $0x4c4] ss:$16 sps:$4 sm:$0xff]   ;;  %v3249_v38 = vld [vmem:[#allocation5 + $0x4c0] ss:$16 sps:$4 sm:$0xff]   ;;  %v88_v40 = vld [vmem:[#allocation2 + $0x28] sm:$0xff] }
  0x75   :  { %v96_v41 = vld [vmem:[#allocation2 + $0x68] sm:$0xff]  ;;  %v3261_v49 = vld [vmem:[#allocation5 + $0x500] ss:$16 sps:$4 sm:$0xff]   ;;  %v3269_v51 = vld [vmem:[#allocation5 + $0x524] ss:$16 sps:$4 sm:$0xff]  }
  0x76   :  { %1686 = vmatpush1.bf16.msra.mxu1 %v3181_v42  ;;  %v3257_v42 = vld [vmem:[#allocation5 + $0x4e4] ss:$16 sps:$4 sm:$0xff]   ;;  %v3291_v6 = vld [vmem:[#allocation5 + $0x5a0] ss:$16 sps:$4 sm:$0xff]  }
  0x77   :  { %1729 = vmatpush1.bf16.msra.mxu0 %v3182_v43  ;;  %1687 = vmatprep.subr.bf16.mxu1 %v3183_v44  ;;  %v3260_v43 = vld [vmem:[#allocation5 + $0xec] ss:$16 sps:$4 sm:$0xff]   ;;  %v3850_v44 = vpack.c.bf16 %v96_v41, %v88_v40  ;;  %v3297_v10 = vld [vmem:[#allocation5 + $0x5c0] ss:$16 sps:$4 sm:$0xff]  }
  0x78   :  { %1730 = vmatprep.subr.bf16.mxu0 %v3185_v45  ;;  %v3255_v45 = vld [vmem:[#allocation5 + $0x4e0] ss:$16 sps:$4 sm:$0xff]   ;;  %v3338_v40 = vld [vmem:[#allocation5 + $0x28c] ss:$16 sps:$4 sm:$0xff]  }
  0x79   :  { %v3333_v41 = vld [vmem:[#allocation5 + $0x680] ss:$16 sps:$4 sm:$0xff]  }
  0x7a   :  { %1688 = vmatpush1.bf16.msra.mxu1 %v3187_v47  ;;  %v3263_v47 = vld [vmem:[#allocation5 + $0x504] ss:$16 sps:$4 sm:$0xff]  }
  0x7b   :  { %1731 = vmatpush1.bf16.msra.mxu0 %v3188_v48  ;;  %1689 = vmatprep.subr.bf16.mxu1 %v3189_v53  ;;  %v3266_v48 = vld [vmem:[#allocation5 + $0x10c] ss:$16 sps:$4 sm:$0xff]   ;;  %v3267_v53 = vld [vmem:[#allocation5 + $0x520] ss:$16 sps:$4 sm:$0xff]  }
  0x7c   :  { %1732 = vmatprep.subr.bf16.mxu0 %v3191_v54  ;;  %v3270_v54 = vld [vmem:[#allocation5 + $0x128] ss:$16 sps:$4 sm:$0xff]  }
  0x7e   :  { %1690 = vmatpush1.bf16.msra.mxu1 %v3193_v56  ;;  %v3275_v56 = vld [vmem:[#allocation5 + $0x544] ss:$16 sps:$4 sm:$0xff]  }
  0x7f   :  { %1733 = vmatpush1.bf16.msra.mxu0 %v3194_v57  ;;  %1691 = vmatprep.subr.bf16.mxu1 %v3195_v58  ;;  %v3278_v57 = vld [vmem:[#allocation5 + $0x14c] ss:$16 sps:$4 sm:$0xff]   ;;  %v3273_v58 = vld [vmem:[#allocation5 + $0x540] ss:$16 sps:$4 sm:$0xff]  }
  0x80   :  { %1734 = vmatprep.subr.bf16.mxu0 %v3197_v59  ;;  %v3276_v59 = vld [vmem:[#allocation5 + $0x148] ss:$16 sps:$4 sm:$0xff]  }
  0x82   :  { %1692 = vmatpush1.bf16.msra.mxu1 %v3199_v60  ;;  %v3281_v60 = vld [vmem:[#allocation5 + $0x564] ss:$16 sps:$4 sm:$0xff]  }
  0x83   :  { %1735 = vmatpush1.bf16.msra.mxu0 %v3200_v61  ;;  %1693 = vmatprep.subr.bf16.mxu1 %v3201_v62  ;;  %v3284_v61 = vld [vmem:[#allocation5 + $0x16c] ss:$16 sps:$4 sm:$0xff]   ;;  %v3279_v62 = vld [vmem:[#allocation5 + $0x560] ss:$16 sps:$4 sm:$0xff]  }
  0x84   :  { %1736 = vmatprep.subr.bf16.mxu0 %v3203_v63  ;;  %v3282_v63 = vld [vmem:[#allocation5 + $0x168] ss:$16 sps:$4 sm:$0xff]  }
  0x86   :  { %1694 = vmatpush1.bf16.msra.mxu1 %v3205_v0  ;;  %v3287_v0 = vld [vmem:[#allocation5 + $0x584] ss:$16 sps:$4 sm:$0xff]  }
  0x87   :  { %1737 = vmatpush1.bf16.msra.mxu0 %v3206_v1  ;;  %1695 = vmatprep.subr.bf16.mxu1 %v3207_v2  ;;  %v3290_v1 = vld [vmem:[#allocation5 + $0x18c] ss:$16 sps:$4 sm:$0xff]   ;;  %v3285_v2 = vld [vmem:[#allocation5 + $0x580] ss:$16 sps:$4 sm:$0xff]  }
  0x88   :  { %1738 = vmatprep.subr.bf16.mxu0 %v3209_v3  ;;  %v3288_v3 = vld [vmem:[#allocation5 + $0x188] ss:$16 sps:$4 sm:$0xff]  }
  0x8a   :  { %1696 = vmatpush1.bf16.msra.mxu1 %v3211_v4  ;;  %v3293_v4 = vld [vmem:[#allocation5 + $0x5a4] ss:$16 sps:$4 sm:$0xff]  }
  0x8b   :  { %1739 = vmatpush1.bf16.msra.mxu0 %v3212_v5  ;;  %1837 = vmatprep.subr.bf16.mxu1 %v3218_v11  ;;  %v3296_v5 = vld [vmem:[#allocation5 + $0x1ac] ss:$16 sps:$4 sm:$0xff]   ;;  %v3300_v11 = vld [vmem:[#allocation5 + $0x1c8] ss:$16 sps:$4 sm:$0xff]  }
  0x8c   :  { %1751 = vmatprep.subr.bf16.mxu0 %v3215_v8  ;;  %v3299_v8 = vld [vmem:[#allocation5 + $0x5c4] ss:$16 sps:$4 sm:$0xff]  }
  0x8d   :  { %1698 = vmatmul.mubr.bf16.vlgmr.msra.gmra.mrb[0].mxu1 %v3843_v12 }
  0x8e   :  { %1741 = vmatmul.mubr.bf16.vlgmr.msra.gmra.mrb[0].mxu0 %v3845_v15  ;;  %1838 = vmatpush1.bf16.msra.mxu1 %v3216_v14  ;;  %v3308_v14 = vld [vmem:[#allocation5 + $0x1ec] ss:$16 sps:$4 sm:$0xff]  }
  0x8f   :  { %1752 = vmatpush1.bf16.msra.mxu0 %v3213_v13  ;;  %1839 = vmatprep.subr.bf16.mxu1 %v3224_v17  ;;  %v3305_v13 = vld [vmem:[#allocation5 + $0x5e4] ss:$16 sps:$4 sm:$0xff]   ;;  %v3306_v17 = vld [vmem:[#allocation5 + $0x1e8] ss:$16 sps:$4 sm:$0xff]  }
  0x90   :  { %1753 = vmatprep.subr.bf16.mxu0 %v3221_v16  ;;  %1869 = vmatprep.mubr.bf16.mxu1 %v3837_v50  ;;  %v3264_v50 = vld [vmem:[#allocation5 + $0x108] ss:$16 sps:$4 sm:$0xff]   ;;  %v3303_v16 = vld [vmem:[#allocation5 + $0x5e0] ss:$16 sps:$4 sm:$0xff]  }
  0x91   :  { %1783 = vmatprep.mubr.bf16.mxu0 %v3850_v44 }
  0x92   :  { %1840 = vmatpush1.bf16.msra.mxu1 %v3222_v19  ;;  %v87_v19 = vld [vmem:[#allocation2 + $0x20] sm:$0xff] }
  0x93   :  { %1754 = vmatpush1.bf16.msra.mxu0 %v3219_v18  ;;  %1841 = vmatprep.subr.bf16.mxu1 %v3230_v21  ;;  %v3311_v18 = vld [vmem:[#allocation5 + $0x604] ss:$16 sps:$4 sm:$0xff]   ;;  %v3314_v21 = vld [vmem:[#allocation5 + $0x20c] ss:$16 sps:$4 sm:$0xff]  }
  0x94   :  { %1755 = vmatprep.subr.bf16.mxu0 %v3227_v20  ;;  %v95_v20 = vld [vmem:[#allocation2 + $0x60] sm:$0xff] }
  0x96   :  { %1842 = vmatpush1.bf16.msra.mxu1 %v3228_v23  ;;  %v3312_v23 = vld [vmem:[#allocation5 + $0x208] ss:$16 sps:$4 sm:$0xff]  }
  0x97   :  { %1756 = vmatpush1.bf16.msra.mxu0 %v3225_v22  ;;  %1843 = vmatprep.subr.bf16.mxu1 %v3236_v25  ;;  %v3309_v22 = vld [vmem:[#allocation5 + $0x600] ss:$16 sps:$4 sm:$0xff]   ;;  %v3317_v25 = vld [vmem:[#allocation5 + $0x624] ss:$16 sps:$4 sm:$0xff]  }
  0x98   :  { %1757 = vmatprep.subr.bf16.mxu0 %v3233_v24  ;;  %v3853_v24 = vpack.c.bf16 %v95_v20, %v87_v19  ;;  %v3398_v19 = vld [vmem:[#allocation5 + $0x3cc] ss:$16 sps:$4 sm:$0xff]   ;;  %v3393_v20 = vld [vmem:[#allocation5 + $0x7c0] ss:$16 sps:$4 sm:$0xff]  }
  0x9a   :  { %1844 = vmatpush1.bf16.msra.mxu1 %v3234_v27  ;;  %v3315_v27 = vld [vmem:[#allocation5 + $0x620] ss:$16 sps:$4 sm:$0xff]  }
  0x9b   :  { %1758 = vmatpush1.bf16.msra.mxu0 %v3231_v26  ;;  %1845 = vmatprep.subr.bf16.mxu1 %v3242_v29  ;;  %v3320_v26 = vld [vmem:[#allocation5 + $0x22c] ss:$16 sps:$4 sm:$0xff]   ;;  %v3323_v29 = vld [vmem:[#allocation5 + $0x644] ss:$16 sps:$4 sm:$0xff]  }
  0x9c   :  { %1759 = vmatprep.subr.bf16.mxu0 %v3239_v28  ;;  %v3318_v28 = vld [vmem:[#allocation5 + $0x228] ss:$16 sps:$4 sm:$0xff]  }
  0x9e   :  { %1846 = vmatpush1.bf16.msra.mxu1 %v3240_v31  ;;  %v98_v31 = vld [vmem:[#allocation2 + $0x78] sm:$0xff] }
  0x9f   :  { %1760 = vmatpush1.bf16.msra.mxu0 %v3237_v30  ;;  %1847 = vmatprep.subr.bf16.mxu1 %v3248_v33  ;;  %v90_v30 = vld [vmem:[#allocation2 + $0x38] sm:$0xff] }
  0xa0   :  { %1761 = vmatprep.subr.bf16.mxu0 %v3245_v32  ;;  %v3326_v32 = vld [vmem:[#allocation5 + $0x24c] ss:$16 sps:$4 sm:$0xff]   ;;  %v3857_v33 = vpack.c.bf16 %v98_v31, %v90_v30  ;;  %v3405_v30 = vld [vmem:[#allocation5 + $0x408] ss:$16 sps:$4 sm:$0xff]  }
  0xa2   :  { %1848 = vmatpush1.bf16.msra.mxu1 %v3246_v35  ;;  %v3324_v35 = vld [vmem:[#allocation5 + $0x248] ss:$16 sps:$4 sm:$0xff]  }
  0xa3   :  { %1762 = vmatpush1.bf16.msra.mxu0 %v3243_v34  ;;  %1849 = vmatprep.subr.bf16.mxu1 %v3254_v37  ;;  %v3321_v34 = vld [vmem:[#allocation5 + $0x640] ss:$16 sps:$4 sm:$0xff]  }
  0xa4   :  { %1763 = vmatprep.subr.bf16.mxu0 %v3251_v36  ;;  %v3332_v36 = vld [vmem:[#allocation5 + $0x26c] ss:$16 sps:$4 sm:$0xff]   ;;  %v3327_v37 = vld [vmem:[#allocation5 + $0x660] ss:$16 sps:$4 sm:$0xff]  }
  0xa6   :  { %1850 = vmatpush1.bf16.msra.mxu1 %v3252_v39  ;;  %v3335_v39 = vld [vmem:[#allocation5 + $0x684] ss:$16 sps:$4 sm:$0xff]  }
  0xa7   :  { %1764 = vmatpush1.bf16.msra.mxu0 %v3249_v38  ;;  %1851 = vmatprep.subr.bf16.mxu1 %v3260_v43  ;;  %v3330_v38 = vld [vmem:[#allocation5 + $0x268] ss:$16 sps:$4 sm:$0xff]   ;;  %v3344_v43 = vld [vmem:[#allocation5 + $0x2ac] ss:$16 sps:$4 sm:$0xff]  }
  0xa8   :  { %1765 = vmatprep.subr.bf16.mxu0 %v3257_v42  ;;  %v3341_v42 = vld [vmem:[#allocation5 + $0x6a4] ss:$16 sps:$4 sm:$0xff]  }
  0xaa   :  { %1852 = vmatpush1.bf16.msra.mxu1 %v3258_v46  ;;  %v3342_v46 = vld [vmem:[#allocation5 + $0x2a8] ss:$16 sps:$4 sm:$0xff]  }
  0xab   :  { %1766 = vmatpush1.bf16.msra.mxu0 %v3255_v45  ;;  %1853 = vmatprep.subr.bf16.mxu1 %v3266_v48  ;;  %v3339_v45 = vld [vmem:[#allocation5 + $0x6a0] ss:$16 sps:$4 sm:$0xff]   ;;  %v3350_v48 = vld [vmem:[#allocation5 + $0x2cc] ss:$16 sps:$4 sm:$0xff]  }
  0xac   :  { %1767 = vmatprep.subr.bf16.mxu0 %v3263_v47  ;;  %v3347_v47 = vld [vmem:[#allocation5 + $0x6c4] ss:$16 sps:$4 sm:$0xff]  }
  0xae   :  { %1854 = vmatpush1.bf16.msra.mxu1 %v3264_v50  ;;  %v3348_v50 = vld [vmem:[#allocation5 + $0x2c8] ss:$16 sps:$4 sm:$0xff]  }
  0xaf   :  { %1768 = vmatpush1.bf16.msra.mxu0 %v3261_v49  ;;  %1855 = vmatprep.subr.bf16.mxu1 %v3272_v52  ;;  %v3345_v49 = vld [vmem:[#allocation5 + $0x6c0] ss:$16 sps:$4 sm:$0xff]   ;;  %v3356_v52 = vld [vmem:[#allocation5 + $0x2ec] ss:$16 sps:$4 sm:$0xff]  }
  0xb0   :  { %1769 = vmatprep.subr.bf16.mxu0 %v3269_v51  ;;  %v3353_v51 = vld [vmem:[#allocation5 + $0x6e4] ss:$16 sps:$4 sm:$0xff]  }
  0xb2   :  { %1856 = vmatpush1.bf16.msra.mxu1 %v3270_v54  ;;  %v3354_v54 = vld [vmem:[#allocation5 + $0x2e8] ss:$16 sps:$4 sm:$0xff]  }
  0xb3   :  { %1770 = vmatpush1.bf16.msra.mxu0 %v3267_v53  ;;  %1857 = vmatprep.subr.bf16.mxu1 %v3278_v57  ;;  %v3351_v53 = vld [vmem:[#allocation5 + $0x6e0] ss:$16 sps:$4 sm:$0xff]   ;;  %v3362_v57 = vld [vmem:[#allocation5 + $0x30c] ss:$16 sps:$4 sm:$0xff]  }
  0xb4   :  { %1771 = vmatprep.subr.bf16.mxu0 %v3275_v56  ;;  %v3359_v56 = vld [vmem:[#allocation5 + $0x704] ss:$16 sps:$4 sm:$0xff]  }
  0xb6   :  { %1858 = vmatpush1.bf16.msra.mxu1 %v3276_v59  ;;  %v3360_v59 = vld [vmem:[#allocation5 + $0x308] ss:$16 sps:$4 sm:$0xff]  }
  0xb7   :  { %1772 = vmatpush1.bf16.msra.mxu0 %v3273_v58  ;;  %1859 = vmatprep.subr.bf16.mxu1 %v3284_v61  ;;  %v3357_v58 = vld [vmem:[#allocation5 + $0x700] ss:$16 sps:$4 sm:$0xff]   ;;  %v3368_v61 = vld [vmem:[#allocation5 + $0x32c] ss:$16 sps:$4 sm:$0xff]  }
  0xb8   :  { %1773 = vmatprep.subr.bf16.mxu0 %v3281_v60  ;;  %v3365_v60 = vld [vmem:[#allocation5 + $0x724] ss:$16 sps:$4 sm:$0xff]  }
  0xba   :  { %1860 = vmatpush1.bf16.msra.mxu1 %v3282_v63  ;;  %v3366_v63 = vld [vmem:[#allocation5 + $0x328] ss:$16 sps:$4 sm:$0xff]  }
  0xbb   :  { %1774 = vmatpush1.bf16.msra.mxu0 %v3279_v62  ;;  %1861 = vmatprep.subr.bf16.mxu1 %v3290_v1  ;;  %v3363_v62 = vld [vmem:[#allocation5 + $0x720] ss:$16 sps:$4 sm:$0xff]   ;;  %v3374_v1 = vld [vmem:[#allocation5 + $0x34c] ss:$16 sps:$4 sm:$0xff]  }
  0xbc   :  { %1775 = vmatprep.subr.bf16.mxu0 %v3287_v0  ;;  %v3371_v0 = vld [vmem:[#allocation5 + $0x744] ss:$16 sps:$4 sm:$0xff]  }
  0xbe   :  { %1862 = vmatpush1.bf16.msra.mxu1 %v3288_v3  ;;  %v3372_v3 = vld [vmem:[#allocation5 + $0x348] ss:$16 sps:$4 sm:$0xff]  }
  0xbf   :  { %1776 = vmatpush1.bf16.msra.mxu0 %v3285_v2  ;;  %1863 = vmatprep.subr.bf16.mxu1 %v3296_v5  ;;  %v3369_v2 = vld [vmem:[#allocation5 + $0x740] ss:$16 sps:$4 sm:$0xff]   ;;  %v3380_v5 = vld [vmem:[#allocation5 + $0x36c] ss:$16 sps:$4 sm:$0xff]  }
  0xc0   :  { %1777 = vmatprep.subr.bf16.mxu0 %v3293_v4  ;;  %v3377_v4 = vld [vmem:[#allocation5 + $0x764] ss:$16 sps:$4 sm:$0xff]  }
  0xc2   :  { %1864 = vmatpush1.bf16.msra.mxu1 %v3294_v7  ;;  %v3378_v7 = vld [vmem:[#allocation5 + $0x368] ss:$16 sps:$4 sm:$0xff]  }
  0xc3   :  { %1778 = vmatpush1.bf16.msra.mxu0 %v3291_v6  ;;  %1865 = vmatprep.subr.bf16.mxu1 %v3302_v9  ;;  %v3375_v6 = vld [vmem:[#allocation5 + $0x760] ss:$16 sps:$4 sm:$0xff]   ;;  %v3386_v9 = vld [vmem:[#allocation5 + $0x38c] ss:$16 sps:$4 sm:$0xff]  }
  0xc4   :  { %1779 = vmatprep.subr.bf16.mxu0 %v3299_v8  ;;  %v3383_v8 = vld [vmem:[#allocation5 + $0x784] ss:$16 sps:$4 sm:$0xff]  }
  0xc6   :  { %1866 = vmatpush1.bf16.msra.mxu1 %v3300_v11  ;;  %v3384_v11 = vld [vmem:[#allocation5 + $0x388] ss:$16 sps:$4 sm:$0xff]  }
  0xc7   :  { %1780 = vmatpush1.bf16.msra.mxu0 %v3297_v10  ;;  %1867 = vmatprep.subr.bf16.mxu1 %v3308_v14  ;;  %v3381_v10 = vld [vmem:[#allocation5 + $0x780] ss:$16 sps:$4 sm:$0xff]   ;;  %v3392_v14 = vld [vmem:[#allocation5 + $0x3ac] ss:$16 sps:$4 sm:$0xff]  }
  0xc8   :  { %1781 = vmatprep.subr.bf16.mxu0 %v3305_v13  ;;  %v3389_v13 = vld [vmem:[#allocation5 + $0x7a4] ss:$16 sps:$4 sm:$0xff]  }
  0xca   :  { %1868 = vmatpush1.bf16.msra.mxu1 %v3306_v17  ;;  %v3390_v17 = vld [vmem:[#allocation5 + $0x3a8] ss:$16 sps:$4 sm:$0xff]  }
  0xcb   :  { %1782 = vmatpush1.bf16.msra.mxu0 %v3303_v16  ;;  %1880 = vmatprep.subr.bf16.mxu1 %v3314_v21  ;;  %v3387_v16 = vld [vmem:[#allocation5 + $0x7a0] ss:$16 sps:$4 sm:$0xff]   ;;  %v3396_v21 = vld [vmem:[#allocation5 + $0x3c8] ss:$16 sps:$4 sm:$0xff]  }
  0xcc   :  { %1794 = vmatprep.subr.bf16.mxu0 %v3311_v18  ;;  %v3395_v18 = vld [vmem:[#allocation5 + $0x7c4] ss:$16 sps:$4 sm:$0xff]  }
  0xcd   :  { %1870 = vmatmul.mubr.bf16.vlgmr.msra.gmra.mrb[4].mxu1 %v3843_v12  ;;  %v3329_v12 = vld [vmem:[#allocation5 + $0x664] ss:$16 sps:$4 sm:$0xff]  }
  0xce   :  { %1784 = vmatmul.mubr.bf16.vlgmr.msra.gmra.mrb[0].mxu0 %v3853_v24  ;;  %1881 = vmatpush1.bf16.msra.mxu1 %v3312_v23  ;;  %v3404_v23 = vld [vmem:[#allocation5 + $0x3ec] ss:$16 sps:$4 sm:$0xff]  }
  0xcf   :  { %1795 = vmatpush1.bf16.msra.mxu0 %v3309_v22  ;;  %1882 = vmatprep.subr.bf16.mxu1 %v3320_v26  ;;  %v3401_v22 = vld [vmem:[#allocation5 + $0x7e4] ss:$16 sps:$4 sm:$0xff]   ;;  %v3402_v26 = vld [vmem:[#allocation5 + $0x3e8] ss:$16 sps:$4 sm:$0xff]  }
  0xd0   :  { %1796 = vmatprep.subr.bf16.mxu0 %v3317_v25  ;;  %1912 = vmatprep.mubr.bf16.mxu1 %v3839_v55  ;;  %v3336_v55 = vld [vmem:[#allocation5 + $0x288] ss:$16 sps:$4 sm:$0xff]   ;;  %v3399_v25 = vld [vmem:[#allocation5 + $0x7e0] ss:$16 sps:$4 sm:$0xff]  }
  0xd1   :  { %1826 = vmatprep.mubr.bf16.mxu0 %v3857_v33 }
  0xd2   :  { %1883 = vmatpush1.bf16.msra.mxu1 %v3318_v28  ;;  %v97_v28 = vld [vmem:[#allocation2 + $0x70] sm:$0xff] }
  0xd3   :  { %1797 = vmatpush1.bf16.msra.mxu0 %v3315_v27  ;;  %1884 = vmatprep.subr.bf16.mxu1 %v3326_v32  ;;  %v89_v27 = vld [vmem:[#allocation2 + $0x30] sm:$0xff]  ;;  %v3410_v32 = vld [vmem:[#allocation5 + $0x42c] ss:$16 sps:$4 sm:$0xff]  }
  0xd4   :  { %1798 = vmatprep.subr.bf16.mxu0 %v3323_v29  ;;  %v3407_v29 = vld [vmem:[#allocation5 + $0x40c] ss:$16 sps:$4 sm:$0xff]   ;;  %v3861_v31 = vpack.c.bf16 %v97_v28, %v89_v27  ;;  %v3450_v27 = vld [vmem:[#allocation5 + $0x5e8] ss:$16 sps:$4 sm:$0xff]  }
  0xd5   :  { %v3455_v28 = vld [vmem:[#allocation5 + $0x60c] ss:$16 sps:$4 sm:$0xff]  }
  0xd6   :  { %1885 = vmatpush1.bf16.msra.mxu1 %v3324_v35  ;;  %v3503_v35 = vld [vmem:[#allocation7 + $0x4] ss:$8 sps:$4 sm:$0xff]  }
  0xd7   :  { %1799 = vmatpush1.bf16.msra.mxu0 %v3321_v34  ;;  %1886 = vmatprep.subr.bf16.mxu1 %v3332_v36  ;;  %v3501_v34 = vld [vmem:[#allocation7] ss:$8 sps:$4 sm:$0xff]   ;;  %v3506_v36 = vld [vmem:[#allocation7 + $0x14] ss:$8 sps:$4 sm:$0xff]  }
  0xd8   :  { %1800 = vmatprep.subr.bf16.mxu0 %v3329_v12  ;;  %v3408_v12 = vld [vmem:[#allocation5 + $0x428] ss:$16 sps:$4 sm:$0xff]  }
  0xda   :  { %1887 = vmatpush1.bf16.msra.mxu1 %v3330_v38  ;;  %v3504_v38 = vld [vmem:[#allocation7 + $0x10] ss:$8 sps:$4 sm:$0xff]  }
  0xdb   :  { %1801 = vmatpush1.bf16.msra.mxu0 %v3327_v37  ;;  %1888 = vmatprep.subr.bf16.mxu1 %v3338_v40  ;;  %v3413_v37 = vld [vmem:[#allocation5 + $0x44c] ss:$16 sps:$4 sm:$0xff]   ;;  %v3411_v40 = vld [vmem:[#allocation5 + $0x448] ss:$16 sps:$4 sm:$0xff]  }
  0xdc   :  { %1802 = vmatprep.subr.bf16.mxu0 %v3335_v39  ;;  %v3509_v39 = vld [vmem:[#allocation7 + $0x24] ss:$8 sps:$4 sm:$0xff]  }
  0xde   :  { %1889 = vmatpush1.bf16.msra.mxu1 %v3336_v55  ;;  %v3414_v55 = vld [vmem:[#allocation5 + $0x468] ss:$16 sps:$4 sm:$0xff]  }
  0xdf   :  { %1803 = vmatpush1.bf16.msra.mxu0 %v3333_v41  ;;  %1890 = vmatprep.subr.bf16.mxu1 %v3344_v43  ;;  %v3416_v41 = vld [vmem:[#allocation5 + $0x46c] ss:$16 sps:$4 sm:$0xff]  }
  0xe0   :  { %1804 = vmatprep.subr.bf16.mxu0 %v3341_v42  ;;  %v3419_v42 = vld [vmem:[#allocation5 + $0x48c] ss:$16 sps:$4 sm:$0xff]  }
  0xe1   :  { %v3512_v43 = vld [vmem:[#allocation7 + $0x34] ss:$8 sps:$4 sm:$0xff]  }
  0xe2   :  { %1891 = vmatpush1.bf16.msra.mxu1 %v3342_v46  ;;  %v3417_v46 = vld [vmem:[#allocation5 + $0x488] ss:$16 sps:$4 sm:$0xff]  }
  0xe3   :  { %1805 = vmatpush1.bf16.msra.mxu0 %v3339_v45  ;;  %1892 = vmatprep.subr.bf16.mxu1 %v3350_v48  ;;  %v3515_v45 = vld [vmem:[#allocation7 + $0x44] ss:$8 sps:$4 sm:$0xff]   ;;  %v3513_v48 = vld [vmem:[#allocation7 + $0x40] ss:$8 sps:$4 sm:$0xff]  }
  0xe4   :  { %1806 = vmatprep.subr.bf16.mxu0 %v3347_v47  ;;  %v3422_v47 = vld [vmem:[#allocation5 + $0x4ac] ss:$16 sps:$4 sm:$0xff]  }
  0xe6   :  { %1893 = vmatpush1.bf16.msra.mxu1 %v3348_v50  ;;  %v3420_v50 = vld [vmem:[#allocation5 + $0x4a8] ss:$16 sps:$4 sm:$0xff]  }
  0xe7   :  { %1807 = vmatpush1.bf16.msra.mxu0 %v3345_v49  ;;  %1894 = vmatprep.subr.bf16.mxu1 %v3356_v52  ;;  %v3518_v49 = vld [vmem:[#allocation7 + $0x54] ss:$8 sps:$4 sm:$0xff]   ;;  %v3516_v52 = vld [vmem:[#allocation7 + $0x50] ss:$8 sps:$4 sm:$0xff]  }
  0xe8   :  { %1808 = vmatprep.subr.bf16.mxu0 %v3353_v51  ;;  %v3425_v51 = vld [vmem:[#allocation5 + $0x4cc] ss:$16 sps:$4 sm:$0xff]  }
  0xea   :  { %1895 = vmatpush1.bf16.msra.mxu1 %v3354_v54  ;;  %v3423_v54 = vld [vmem:[#allocation5 + $0x4c8] ss:$16 sps:$4 sm:$0xff]  }
  0xeb   :  { %1809 = vmatpush1.bf16.msra.mxu0 %v3351_v53  ;;  %1896 = vmatprep.subr.bf16.mxu1 %v3362_v57  ;;  %v3521_v53 = vld [vmem:[#allocation7 + $0x64] ss:$8 sps:$4 sm:$0xff]   ;;  %v3519_v57 = vld [vmem:[#allocation7 + $0x60] ss:$8 sps:$4 sm:$0xff]  }
  0xec   :  { %1810 = vmatprep.subr.bf16.mxu0 %v3359_v56  ;;  %v3428_v56 = vld [vmem:[#allocation5 + $0x4ec] ss:$16 sps:$4 sm:$0xff]  }
  0xee   :  { %1897 = vmatpush1.bf16.msra.mxu1 %v3360_v59  ;;  %v3426_v59 = vld [vmem:[#allocation5 + $0x4e8] ss:$16 sps:$4 sm:$0xff]  }
  0xef   :  { %1811 = vmatpush1.bf16.msra.mxu0 %v3357_v58  ;;  %1898 = vmatprep.subr.bf16.mxu1 %v3368_v61  ;;  %v3524_v58 = vld [vmem:[#allocation7 + $0x74] ss:$8 sps:$4 sm:$0xff]   ;;  %v3522_v61 = vld [vmem:[#allocation7 + $0x70] ss:$8 sps:$4 sm:$0xff]  }
  0xf0   :  { %1812 = vmatprep.subr.bf16.mxu0 %v3365_v60  ;;  %v3431_v60 = vld [vmem:[#allocation5 + $0x50c] ss:$16 sps:$4 sm:$0xff]  }
  0xf2   :  { %1899 = vmatpush1.bf16.msra.mxu1 %v3366_v63  ;;  %v3429_v63 = vld [vmem:[#allocation5 + $0x508] ss:$16 sps:$4 sm:$0xff]  }
  0xf3   :  { %1813 = vmatpush1.bf16.msra.mxu0 %v3363_v62  ;;  %1900 = vmatprep.subr.bf16.mxu1 %v3374_v1  ;;  %v3527_v62 = vld [vmem:[#allocation7 + $0x84] ss:$8 sps:$4 sm:$0xff]   ;;  %v3525_v1 = vld [vmem:[#allocation7 + $0x80] ss:$8 sps:$4 sm:$0xff]  }
  0xf4   :  { %1814 = vmatprep.subr.bf16.mxu0 %v3371_v0  ;;  %v3434_v0 = vld [vmem:[#allocation5 + $0x52c] ss:$16 sps:$4 sm:$0xff]  }
  0xf6   :  { %1901 = vmatpush1.bf16.msra.mxu1 %v3372_v3  ;;  %v3432_v3 = vld [vmem:[#allocation5 + $0x528] ss:$16 sps:$4 sm:$0xff]  }
  0xf7   :  { %1815 = vmatpush1.bf16.msra.mxu0 %v3369_v2  ;;  %1902 = vmatprep.subr.bf16.mxu1 %v3380_v5  ;;  %v3530_v2 = vld [vmem:[#allocation7 + $0x94] ss:$8 sps:$4 sm:$0xff]   ;;  %v3528_v5 = vld [vmem:[#allocation7 + $0x90] ss:$8 sps:$4 sm:$0xff]  }
  0xf8   :  { %1816 = vmatprep.subr.bf16.mxu0 %v3377_v4  ;;  %v3437_v4 = vld [vmem:[#allocation5 + $0x54c] ss:$16 sps:$4 sm:$0xff]  }
  0xfa   :  { %1903 = vmatpush1.bf16.msra.mxu1 %v3378_v7  ;;  %v3435_v7 = vld [vmem:[#allocation5 + $0x548] ss:$16 sps:$4 sm:$0xff]  }
  0xfb   :  { %1817 = vmatpush1.bf16.msra.mxu0 %v3375_v6  ;;  %1904 = vmatprep.subr.bf16.mxu1 %v3386_v9  ;;  %v3533_v6 = vld [vmem:[#allocation7 + $0xa4] ss:$8 sps:$4 sm:$0xff]   ;;  %v3531_v9 = vld [vmem:[#allocation7 + $0xa0] ss:$8 sps:$4 sm:$0xff]  }
  0xfc   :  { %1818 = vmatprep.subr.bf16.mxu0 %v3383_v8  ;;  %v3440_v8 = vld [vmem:[#allocation5 + $0x56c] ss:$16 sps:$4 sm:$0xff]  }
  0xfe   :  { %1905 = vmatpush1.bf16.msra.mxu1 %v3384_v11  ;;  %v3438_v11 = vld [vmem:[#allocation5 + $0x568] ss:$16 sps:$4 sm:$0xff]  }
  0xff   :  { %1819 = vmatpush1.bf16.msra.mxu0 %v3381_v10  ;;  %1906 = vmatprep.subr.bf16.mxu1 %v3392_v14  ;;  %v3536_v10 = vld [vmem:[#allocation7 + $0xb4] ss:$8 sps:$4 sm:$0xff]   ;;  %v3534_v14 = vld [vmem:[#allocation7 + $0xb0] ss:$8 sps:$4 sm:$0xff]  }
 0x100   :  { %1820 = vmatprep.subr.bf16.mxu0 %v3389_v13  ;;  %v3443_v13 = vld [vmem:[#allocation5 + $0x58c] ss:$16 sps:$4 sm:$0xff]  }
 0x102   :  { %1907 = vmatpush1.bf16.msra.mxu1 %v3390_v17  ;;  %v3441_v17 = vld [vmem:[#allocation5 + $0x588] ss:$16 sps:$4 sm:$0xff]  }
 0x103   :  { %1821 = vmatpush1.bf16.msra.mxu0 %v3387_v16  ;;  %1908 = vmatprep.subr.bf16.mxu1 %v3398_v19  ;;  %v3539_v16 = vld [vmem:[#allocation7 + $0xc4] ss:$8 sps:$4 sm:$0xff]   ;;  %v3537_v19 = vld [vmem:[#allocation7 + $0xc0] ss:$8 sps:$4 sm:$0xff]  }
 0x104   :  { %1822 = vmatprep.subr.bf16.mxu0 %v3395_v18  ;;  %v3446_v18 = vld [vmem:[#allocation5 + $0x5ac] ss:$16 sps:$4 sm:$0xff]  }
 0x106   :  { %1909 = vmatpush1.bf16.msra.mxu1 %v3396_v21  ;;  %v3444_v21 = vld [vmem:[#allocation5 + $0x5a8] ss:$16 sps:$4 sm:$0xff]  }
 0x107   :  { %1823 = vmatpush1.bf16.msra.mxu0 %v3393_v20  ;;  %1910 = vmatprep.subr.bf16.mxu1 %v3404_v23  ;;  %v3542_v20 = vld [vmem:[#allocation7 + $0xd4] ss:$8 sps:$4 sm:$0xff]   ;;  %v3540_v23 = vld [vmem:[#allocation7 + $0xd0] ss:$8 sps:$4 sm:$0xff]  }
 0x108   :  { %1824 = vmatprep.subr.bf16.mxu0 %v3401_v22  ;;  %v3449_v22 = vld [vmem:[#allocation5 + $0x5cc] ss:$16 sps:$4 sm:$0xff]  }
 0x10a   :  { %1911 = vmatpush1.bf16.msra.mxu1 %v3402_v26  ;;  %v3452_v26 = vld [vmem:[#allocation5 + $0x5ec] ss:$16 sps:$4 sm:$0xff]  }
 0x10b   :  { %1825 = vmatpush1.bf16.msra.mxu0 %v3399_v25  ;;  %1923 = vmatprep.subr.bf16.mxu1 %v3407_v29  ;;  %v3447_v25 = vld [vmem:[#allocation5 + $0x5c8] ss:$16 sps:$4 sm:$0xff]  }
 0x10c   :  { %2417 = vmatprep.subr.bf16.mxu0 %v3503_v35  ;;  %v3453_v29 = vld [vmem:[#allocation5 + $0x608] ss:$16 sps:$4 sm:$0xff]  }
 0x10d   :  { %1913 = vmatmul.mubr.bf16.vlgmr.msra.gmra.mrb[4].mxu1 %v3845_v15  ;;  %v3507_v15 = vld [vmem:[#allocation7 + $0x20] ss:$8 sps:$4 sm:$0xff]  }
 0x10e   :  { %1827 = vmatmul.mubr.bf16.vlgmr.msra.gmra.mrb[0].mxu0 %v3861_v31  ;;  %1924 = vmatpush1.bf16.msra.mxu1 %v3405_v30  ;;  %v3458_v30 = vld [vmem:[#allocation5 + $0x62c] ss:$16 sps:$4 sm:$0xff]   ;;  %v3459_v35 = vld [vmem:[#allocation5 + $0x648] ss:$16 sps:$4 sm:$0xff]  }
 0x10f   :  { %1955 = vmatprep.mubr.bf16.mxu1 %v3850_v44  ;;  %1925 = vmatprep.subr.bf16.mxu1 %v3410_v32  ;;  %v3510_v44 = vld [vmem:[#allocation7 + $0x30] ss:$8 sps:$4 sm:$0xff]  }
 0x110   :  { %2418 = vmatpush1.bf16.msra.mxu0 %v3501_v34  ;;  %v3456_v32 = vld [vmem:[#allocation5 + $0x628] ss:$16 sps:$4 sm:$0xff]   ;;  %v3461_v34 = vld [vmem:[#allocation5 + $0x64c] ss:$16 sps:$4 sm:$0xff]  }
 0x111   :  { %2419 = vmatprep.subr.bf16.mxu0 %v3506_v36  ;;  %v3462_v36 = vld [vmem:[#allocation5 + $0x668] ss:$16 sps:$4 sm:$0xff]  }
 0x112   :  { %1926 = vmatpush1.bf16.msra.mxu1 %v3408_v12  ;;  %v3464_v12 = vld [vmem:[#allocation5 + $0x66c] ss:$16 sps:$4 sm:$0xff]  }
 0x113   :  { %1927 = vmatprep.subr.bf16.mxu1 %v3413_v37  ;;  %v3467_v37 = vld [vmem:[#allocation5 + $0x68c] ss:$16 sps:$4 sm:$0xff]  }
 0x114   :  { %2420 = vmatpush1.bf16.msra.mxu0 %v3504_v38  ;;  %v3465_v38 = vld [vmem:[#allocation5 + $0x688] ss:$16 sps:$4 sm:$0xff]  }
 0x115   :  { %2421 = vmatprep.subr.bf16.mxu0 %v3509_v39  ;;  %v3470_v39 = vld [vmem:[#allocation5 + $0x6ac] ss:$16 sps:$4 sm:$0xff]  }
 0x116   :  { %1928 = vmatpush1.bf16.msra.mxu1 %v3411_v40  ;;  %v3473_v40 = vld [vmem:[#allocation5 + $0x6cc] ss:$16 sps:$4 sm:$0xff]  }
 0x117   :  { %1929 = vmatprep.subr.bf16.mxu1 %v3416_v41 }
 0x118   :  { %2422 = vmatpush1.bf16.msra.mxu0 %v3507_v15  ;;  %v3545_v15 = vld [vmem:[#allocation7 + $0xe4] ss:$8 sps:$4 sm:$0xff]  }
 0x119   :  { %2423 = vmatprep.subr.bf16.mxu0 %v3512_v43  ;;  %v3543_v43 = vld [vmem:[#allocation7 + $0xe0] ss:$8 sps:$4 sm:$0xff]  }
 0x11a   :  { %1930 = vmatpush1.bf16.msra.mxu1 %v3414_v55 }
 0x11b   :  { %1931 = vmatprep.subr.bf16.mxu1 %v3419_v42  ;;  %v3471_v42 = vld [vmem:[#allocation5 + $0x6c8] ss:$16 sps:$4 sm:$0xff]  }
 0x11c   :  { %2424 = vmatpush1.bf16.msra.mxu0 %v3510_v44 }
 0x11d   :  { %2425 = vmatprep.subr.bf16.mxu0 %v3515_v45  ;;  %v3476_v45 = vld [vmem:[#allocation5 + $0x6ec] ss:$16 sps:$4 sm:$0xff]  }
 0x11e   :  { %1932 = vmatpush1.bf16.msra.mxu1 %v3417_v46  ;;  %v3548_v46 = vld [vmem:[#allocation7 + $0xf4] ss:$8 sps:$4 sm:$0xff]  }
 0x11f   :  { %1933 = vmatprep.subr.bf16.mxu1 %v3422_v47  ;;  %v3474_v47 = vld [vmem:[#allocation5 + $0x6e8] ss:$16 sps:$4 sm:$0xff]  }
 0x120   :  { %2426 = vmatpush1.bf16.msra.mxu0 %v3513_v48  ;;  %v3546_v48 = vld [vmem:[#allocation7 + $0xf0] ss:$8 sps:$4 sm:$0xff]  }
 0x121   :  { %2427 = vmatprep.subr.bf16.mxu0 %v3518_v49  ;;  %v3479_v49 = vld [vmem:[#allocation5 + $0x70c] ss:$16 sps:$4 sm:$0xff]  }
 0x122   :  { %1934 = vmatpush1.bf16.msra.mxu1 %v3420_v50  ;;  %v3477_v50 = vld [vmem:[#allocation5 + $0x708] ss:$16 sps:$4 sm:$0xff]  }
 0x123   :  { %1935 = vmatprep.subr.bf16.mxu1 %v3425_v51  ;;  %v3482_v51 = vld [vmem:[#allocation5 + $0x72c] ss:$16 sps:$4 sm:$0xff]  }
 0x124   :  { %2428 = vmatpush1.bf16.msra.mxu0 %v3516_v52  ;;  %v3551_v52 = vld [vmem:[#allocation7 + $0x104] ss:$8 sps:$4 sm:$0xff]  }
 0x125   :  { %2429 = vmatprep.subr.bf16.mxu0 %v3521_v53  ;;  %v3480_v53 = vld [vmem:[#allocation5 + $0x728] ss:$16 sps:$4 sm:$0xff]  }
 0x126   :  { %1936 = vmatpush1.bf16.msra.mxu1 %v3423_v54  ;;  %v3485_v54 = vld [vmem:[#allocation5 + $0x74c] ss:$16 sps:$4 sm:$0xff]  }
 0x127   :  { %1937 = vmatprep.subr.bf16.mxu1 %v3428_v56  ;;  %v3483_v56 = vld [vmem:[#allocation5 + $0x748] ss:$16 sps:$4 sm:$0xff]  }
 0x128   :  { %2430 = vmatpush1.bf16.msra.mxu0 %v3519_v57  ;;  %v3488_v57 = vld [vmem:[#allocation5 + $0x76c] ss:$16 sps:$4 sm:$0xff]  }
 0x129   :  { %2431 = vmatprep.subr.bf16.mxu0 %v3524_v58  ;;  %v3486_v58 = vld [vmem:[#allocation5 + $0x768] ss:$16 sps:$4 sm:$0xff]  }
 0x12a   :  { %1938 = vmatpush1.bf16.msra.mxu1 %v3426_v59  ;;  %v3491_v59 = vld [vmem:[#allocation5 + $0x78c] ss:$16 sps:$4 sm:$0xff]  }
 0x12b   :  { %1939 = vmatprep.subr.bf16.mxu1 %v3431_v60  ;;  %v3489_v60 = vld [vmem:[#allocation5 + $0x788] ss:$16 sps:$4 sm:$0xff]  }
 0x12c   :  { %2432 = vmatpush1.bf16.msra.mxu0 %v3522_v61  ;;  %v3494_v61 = vld [vmem:[#allocation5 + $0x7ac] ss:$16 sps:$4 sm:$0xff]  }
 0x12d   :  { %2433 = vmatprep.subr.bf16.mxu0 %v3527_v62  ;;  %v3492_v62 = vld [vmem:[#allocation5 + $0x7a8] ss:$16 sps:$4 sm:$0xff]  }
 0x12e   :  { %1940 = vmatpush1.bf16.msra.mxu1 %v3429_v63  ;;  %v3497_v63 = vld [vmem:[#allocation5 + $0x7cc] ss:$16 sps:$4 sm:$0xff]  }
 0x12f   :  { %1941 = vmatprep.subr.bf16.mxu1 %v3434_v0  ;;  %v3495_v0 = vld [vmem:[#allocation5 + $0x7c8] ss:$16 sps:$4 sm:$0xff]  }
 0x130   :  { %2434 = vmatpush1.bf16.msra.mxu0 %v3525_v1  ;;  %v3500_v1 = vld [vmem:[#allocation5 + $0x7ec] ss:$16 sps:$4 sm:$0xff]  }
 0x131   :  { %2435 = vmatprep.subr.bf16.mxu0 %v3530_v2  ;;  %v3498_v2 = vld [vmem:[#allocation5 + $0x7e8] ss:$16 sps:$4 sm:$0xff]  }
 0x132   :  { %1942 = vmatpush1.bf16.msra.mxu1 %v3432_v3  ;;  %v365_v3 = vlaneseq }
 0x133   :  { %1943 = vmatprep.subr.bf16.mxu1 %v3437_v4 }
 0x134   :  { %2436 = vmatpush1.bf16.msra.mxu0 %v3528_v5  ;;  %v3869_v4 = vshrl.u32 %v365_v3, 7  ;;  %v3591_v3 = vld [vmem:[#allocation7 + $0x1e0] ss:$8 sps:$4 sm:$0xff]  }
 0x135   :  { %2437 = vmatprep.subr.bf16.mxu0 %v3533_v6  ;;  %v3875_v6 = vld [vmem:[%s3915_s2] sm:$0xf] }
 0x136   :  { %1944 = vmatpush1.bf16.msra.mxu1 %v3435_v7  ;;  %v367_v5 = vsub.s32 0, %v3869_v4  ;;  %v371_v7 = vsub.s32 1, %v3869_v4 }
 0x137   :  { %1945 = vmatprep.subr.bf16.mxu1 %v3440_v8 }
 0x138   :  { %2438 = vmatpush1.bf16.msra.mxu0 %v3531_v9  ;;  %v368_v8 = vrot.slane %v3875_v6, %v367_v5 }
 0x139   :  { %2439 = vmatprep.subr.bf16.mxu0 %v3536_v10 }
 0x13a   :  { %1946 = vmatpush1.bf16.msra.mxu1 %v3438_v11 }
 0x13b   :  { %1947 = vmatprep.subr.bf16.mxu1 %v3443_v13 }
 0x13c   :  { %2440 = vmatpush1.bf16.msra.mxu0 %v3534_v14 }
 0x13d   :  { %2441 = vmatprep.subr.bf16.mxu0 %v3539_v16 }
 0x13e   :  { %1948 = vmatpush1.bf16.msra.mxu1 %v3441_v17 }
 0x13f   :  { %1949 = vmatprep.subr.bf16.mxu1 %v3446_v18 }
 0x140   :  { %2442 = vmatpush1.bf16.msra.mxu0 %v3537_v19 }
 0x141   :  { %2443 = vmatprep.subr.bf16.mxu0 %v3542_v20 }
 0x142   :  { %1950 = vmatpush1.bf16.msra.mxu1 %v3444_v21 }
 0x143   :  { %1951 = vmatprep.subr.bf16.mxu1 %v3449_v22 }
 0x144   :  { %2444 = vmatpush1.bf16.msra.mxu0 %v3540_v23 }
 0x145   :  { %2445 = vmatprep.subr.bf16.mxu0 %v3545_v15  ;;  %v3558_v15 = vld [vmem:[#allocation7 + $0x130] ss:$8 sps:$4 sm:$0xff]  }
 0x146   :  { %1952 = vmatpush1.bf16.msra.mxu1 %v3447_v25 }
 0x147   :  { %1953 = vmatprep.subr.bf16.mxu1 %v3452_v26 }
 0x148   :  { %2446 = vmatpush1.bf16.msra.mxu0 %v3543_v43  ;;  %v3605_v43 = vld [vmem:[#allocation8 + $0x60] sm:$0xff]  }
 0x149   :  { %2447 = vmatprep.subr.bf16.mxu0 %v3548_v46  ;;  %v3606_v46 = vld [vmem:[#allocation8 + $0x20] sm:$0xff]  }
 0x14a   :  { %1954 = vmatpush1.bf16.msra.mxu1 %v3450_v27 }
 0x14b   :  { %1966 = vmatprep.subr.bf16.mxu1 %v3455_v28 }
 0x14c   :  { %2448 = vmatpush1.bf16.msra.mxu0 %v3546_v48  ;;  %v3564_v48 = vld [vmem:[#allocation7 + $0x150] ss:$8 sps:$4 sm:$0xff]  }
 0x14d   :  { %1956 = vmatmul.mubr.bf16.vlgmr.msra.gmra.mrb[4].mxu1 %v3853_v24  ;;  %v3468_v24 = vld [vmem:[#allocation5 + $0x6a8] ss:$16 sps:$4 sm:$0xff]   ;;  %2460 = vmatprep.subr.bf16.mxu0 %v3551_v52 }
 0x14e   :  { %1967 = vmatpush1.bf16.msra.mxu1 %v3453_v29  ;;  %1998 = vmatprep.mubr.bf16.mxu1 %v3857_v33  ;;  %v3570_v52 = vld [vmem:[#allocation7 + $0x170] ss:$8 sps:$4 sm:$0xff]  }
 0x14f   :  { %1968 = vmatprep.subr.bf16.mxu1 %v3458_v30  ;;  %v3549_v30 = vld [vmem:[#allocation7 + $0x100] ss:$8 sps:$4 sm:$0xff]  }
 0x152   :  { %1969 = vmatpush1.bf16.msra.mxu1 %v3456_v32  ;;  %v3554_v32 = vld [vmem:[#allocation7 + $0x114] ss:$8 sps:$4 sm:$0xff]  }
 0x153   :  { %1970 = vmatprep.subr.bf16.mxu1 %v3461_v34  ;;  %v3597_v34 = vld [vmem:[#allocation8 + $0x40] sm:$0xff]  }
 0x156   :  { %1971 = vmatpush1.bf16.msra.mxu1 %v3459_v35  ;;  %v3598_v35 = vld [vmem:[#allocation8] sm:$0xff]  }
 0x157   :  { %1972 = vmatprep.subr.bf16.mxu1 %v3464_v12  ;;  %v3599_v12 = vld [vmem:[#allocation8 + $0x48] sm:$0xff]  }
 0x15a   :  { %1973 = vmatpush1.bf16.msra.mxu1 %v3462_v36  ;;  %v3552_v36 = vld [vmem:[#allocation7 + $0x110] ss:$8 sps:$4 sm:$0xff]  }
 0x15b   :  { %1974 = vmatprep.subr.bf16.mxu1 %v3467_v37  ;;  %v3557_v37 = vld [vmem:[#allocation7 + $0x124] ss:$8 sps:$4 sm:$0xff]  }
 0x15e   :  { %1975 = vmatpush1.bf16.msra.mxu1 %v3465_v38  ;;  %v3600_v38 = vld [vmem:[#allocation8 + $0x8] sm:$0xff]  }
 0x15f   :  { %1976 = vmatprep.subr.bf16.mxu1 %v3470_v39  ;;  %v3601_v39 = vld [vmem:[#allocation8 + $0x50] sm:$0xff]  }
 0x160   :  { %v1699_v41 = vpop.f32.mrb[0].mxu1 }
 0x161   :  { %v1701_v33 = vpop.f32.mrb[1].mxu1  ;;  %v1700_v9 = vadd.f32 %v1699_v41, %v368_v8  ;;  %v3602_v41 = vld [vmem:[#allocation8 + $0x10] sm:$0xff]  }
 0x162   :  { %v1703_v55 = vpop.f32.mrb[2].mxu1  ;;  %1977 = vmatpush1.bf16.msra.mxu1 %v3468_v24  ;;  %v3555_v24 = vld [vmem:[#allocation7 + $0x120] ss:$8 sps:$4 sm:$0xff]  }
 0x163   :  { %v1705_v44 = vpop.f32.mrb[3].mxu1  ;;  %1978 = vmatprep.subr.bf16.mxu1 %v3473_v40  ;;  %v1704_v13 = vadd.f32 %v1703_v55, %v368_v8  ;;  %v3560_v40 = vld [vmem:[#allocation7 + $0x134] ss:$8 sps:$4 sm:$0xff]   ;;  %v3563_v55 = vld [vmem:[#allocation7 + $0x144] ss:$8 sps:$4 sm:$0xff]  }
 0x164   :  { %v3596_v8 = vld [vmem:[#allocation7 + $0x1f4] ss:$8 sps:$4 sm:$0xff]  }
 0x166   :  { %1979 = vmatpush1.bf16.msra.mxu1 %v3471_v42  ;;  %v3604_v42 = vld [vmem:[#allocation8 + $0x18] sm:$0xff]  }
 0x167   :  { %1980 = vmatprep.subr.bf16.mxu1 %v3476_v45  ;;  %v3566_v45 = vld [vmem:[#allocation7 + $0x154] ss:$8 sps:$4 sm:$0xff]  }
 0x16a   :  { %1981 = vmatpush1.bf16.msra.mxu1 %v3474_v47  ;;  %v3607_v47 = vld [vmem:[#allocation8 + $0x68] sm:$0xff]  }
 0x16b   :  { %1982 = vmatprep.subr.bf16.mxu1 %v3479_v49  ;;  %v3569_v49 = vld [vmem:[#allocation7 + $0x164] ss:$8 sps:$4 sm:$0xff]  }
 0x16e   :  { %1983 = vmatpush1.bf16.msra.mxu1 %v3477_v50  ;;  %v3567_v50 = vld [vmem:[#allocation7 + $0x160] ss:$8 sps:$4 sm:$0xff]  }
 0x16f   :  { %1984 = vmatprep.subr.bf16.mxu1 %v3482_v51  ;;  %v3572_v51 = vld [vmem:[#allocation7 + $0x174] ss:$8 sps:$4 sm:$0xff]  }
 0x172   :  { %1985 = vmatpush1.bf16.msra.mxu1 %v3480_v53  ;;  %v3575_v53 = vld [vmem:[#allocation7 + $0x184] ss:$8 sps:$4 sm:$0xff]  }
 0x173   :  { %1986 = vmatprep.subr.bf16.mxu1 %v3485_v54  ;;  %v3573_v54 = vld [vmem:[#allocation7 + $0x180] ss:$8 sps:$4 sm:$0xff]  }
 0x176   :  { %1987 = vmatpush1.bf16.msra.mxu1 %v3483_v56  ;;  %v3578_v56 = vld [vmem:[#allocation7 + $0x194] ss:$8 sps:$4 sm:$0xff]  }
 0x177   :  { %1988 = vmatprep.subr.bf16.mxu1 %v3488_v57  ;;  %v3576_v57 = vld [vmem:[#allocation7 + $0x190] ss:$8 sps:$4 sm:$0xff]  }
 0x17a   :  { %1989 = vmatpush1.bf16.msra.mxu1 %v3486_v58  ;;  %v3581_v58 = vld [vmem:[#allocation7 + $0x1a4] ss:$8 sps:$4 sm:$0xff]  }
 0x17b   :  { %1990 = vmatprep.subr.bf16.mxu1 %v3491_v59  ;;  %v3579_v59 = vld [vmem:[#allocation7 + $0x1a0] ss:$8 sps:$4 sm:$0xff]  }
 0x17e   :  { %1991 = vmatpush1.bf16.msra.mxu1 %v3489_v60  ;;  %v3584_v60 = vld [vmem:[#allocation7 + $0x1b4] ss:$8 sps:$4 sm:$0xff]  }
 0x17f   :  { %1992 = vmatprep.subr.bf16.mxu1 %v3494_v61  ;;  %v3582_v61 = vld [vmem:[#allocation7 + $0x1b0] ss:$8 sps:$4 sm:$0xff]  }
 0x182   :  { %1993 = vmatpush1.bf16.msra.mxu1 %v3492_v62  ;;  %v3587_v62 = vld [vmem:[#allocation7 + $0x1c4] ss:$8 sps:$4 sm:$0xff]  }
 0x183   :  { %1994 = vmatprep.subr.bf16.mxu1 %v3497_v63  ;;  %v3585_v63 = vld [vmem:[#allocation7 + $0x1c0] ss:$8 sps:$4 sm:$0xff]  }
 0x186   :  { %1995 = vmatpush1.bf16.msra.mxu1 %v3495_v0  ;;  %v3590_v0 = vld [vmem:[#allocation7 + $0x1d4] ss:$8 sps:$4 sm:$0xff]  }
 0x187   :  { %1996 = vmatprep.subr.bf16.mxu1 %v3500_v1  ;;  %v3588_v1 = vld [vmem:[#allocation7 + $0x1d0] ss:$8 sps:$4 sm:$0xff]  }
 0x18a   :  { %1997 = vmatpush1.bf16.msra.mxu1 %v3498_v2  ;;  %v3593_v2 = vld [vmem:[#allocation7 + $0x1e4] ss:$8 sps:$4 sm:$0xff]  }
 0x18b   :  { %3043 = vmatprep.subr.bf16.mxu1 %v3597_v34  ;;  %v3611_v34 = vld [vmem:[#allocation8 + $0x78] sm:$0xff]  }
 0x18d   :  { %1999 = vmatmul.mubr.bf16.vlgmr.msra.gmra.mrb[4].mxu1 %v3861_v31  ;;  %v372_v31 = vrot.slane %v3875_v6, %v371_v7 }
 0x18e   :  { %3044 = vmatpush3.bf16.msra.mxu1 %v3598_v35  ;;  %v3612_v35 = vld [vmem:[#allocation8 + $0x38] sm:$0xff]  }
 0x18f   :  { %v1702_v10 = vadd.f32 %v1701_v33, %v372_v31  ;;  %v1706_v17 = vadd.f32 %v1705_v44, %v372_v31  ;;  %3045 = vmatprep.subr.bf16.mxu1 %v3599_v12  ;;  %v3603_v33 = vld [vmem:[#allocation8 + $0x58] sm:$0xff]   ;;  %v3561_v44 = vld [vmem:[#allocation7 + $0x140] ss:$8 sps:$4 sm:$0xff]  }
 0x190   :  { %v3594_v31 = vld [vmem:[#allocation7 + $0x1f0] ss:$8 sps:$4 sm:$0xff]   ;;  %v2085_v12 = vld [vmem:[%s3917_s4] sm:$0x3] }
 0x192   :  { %3046 = vmatpush3.bf16.msra.mxu1 %v3600_v38 }
 0x193   :  { %3047 = vmatprep.subr.bf16.mxu1 %v3601_v39 }
 0x196   :  { %3048 = vmatpush3.bf16.msra.mxu1 %v3602_v41 }
 0x197   :  { %3049 = vmatprep.subr.bf16.mxu1 %v3603_v33 }
 0x19a   :  { %3050 = vmatpush3.bf16.msra.mxu1 %v3604_v42 }
 0x19b   :  { %3051 = vmatprep.subr.bf16.mxu1 %v3605_v43 }
 0x19e   :  { %3052 = vmatpush3.bf16.msra.mxu1 %v3606_v46 }
 0x19f   :  { %3053 = vmatprep.subr.bf16.mxu1 %v3607_v47 }
 0x1e1   :  { %v1828_v11 = vpop.f32.mrb[0].mxu0 }
 0x1e2   :  { %v3066_v14 = vadd.f32 %v1828_v11, %v1700_v9  ;;  %v1830_v16 = vpop.f32.mrb[1].mxu0  ;;  %v375_v9 = vsub.s32 2, %v3869_v4 }
 0x1e3   :  { %v3068_v18 = vadd.f32 %v1830_v16, %v1702_v10  ;;  %v1832_v19 = vpop.f32.mrb[2].mxu0  ;;  %v379_v10 = vsub.s32 3, %v3869_v4  ;;  %v3026_v4 = vld [vmem:[%s3919_s6] ss:$0 sm:$0xff] }
 0x1e4   :  { %v3070_v20 = vadd.f32 %v1832_v19, %v1704_v13  ;;  %v1834_v21 = vpop.f32.mrb[3].mxu0  ;;  %v2009_v23 = vmax.f32 %v3066_v14, 0.0  ;;  %v376_v11 = vrot.slane %v3875_v6, %v375_v9 }
 0x1e5   :  { %v3072_v22 = vadd.f32 %v1834_v21, %v1706_v17  ;;  %v2010_v26 = vmax.f32 %v3068_v18, 0.0  ;;  %v380_v13 = vrot.slane %v3875_v6, %v379_v10  ;;  %v3610_v6 = vld [vmem:[#allocation8 + $0x30] sm:$0xff]  }
 0x1e6   :  { %v2013_v25 = vmax.f32 %v3070_v20, 0.0 }
 0x1e7   :  { %v2014_v27 = vmax.f32 %v3072_v22, 0.0 }
 0x1e8   :  { %v2017_v28 = vpack.c.bf16 %v2013_v25, %v2009_v23 }
 0x1e9   :  { %v2018_v29 = vpack.c.bf16 %v2014_v27, %v2010_v26 }
 0x1eb   :  { %2449 = vmatprep.mubr.bf16.mxu0 %v2018_v29 }
 0x1ec   :  { %2450 = vmatmul.mubr.bf16.vlgmr.msra.gmra.mrb[4].mxu0 %v2017_v28 }
 0x1ed   :  { %2461 = vmatpush1.bf16.msra.mxu0 %v3549_v30  ;;  %v3608_v30 = vld [vmem:[#allocation8 + $0x28] sm:$0xff]  }
 0x1ee   :  { %2462 = vmatprep.subr.bf16.mxu0 %v3554_v32  ;;  %3054 = vmatpush3.bf16.msra.mxu1 %v3608_v30  ;;  %v3609_v32 = vld [vmem:[#allocation8 + $0x70] sm:$0xff]  }
 0x1ef   :  { %3055 = vmatprep.subr.bf16.mxu1 %v3609_v32 }
 0x1f1   :  { %2463 = vmatpush1.bf16.msra.mxu0 %v3552_v36  ;;  %v2090_v36 = vrot.slane %v2085_v12, %v367_v5 }
 0x1f2   :  { %2464 = vmatprep.subr.bf16.mxu0 %v3557_v37  ;;  %3056 = vmatpush3.bf16.msra.mxu1 %v3610_v6  ;;  %v2094_v37 = vrot.slane %v2085_v12, %v371_v7 }
 0x1f3   :  { %3057 = vmatprep.subr.bf16.mxu1 %v3611_v34 }
 0x1f5   :  { %2465 = vmatpush1.bf16.msra.mxu0 %v3555_v24 }
 0x1f6   :  { %2466 = vmatprep.subr.bf16.mxu0 %v3560_v40  ;;  %3058 = vmatpush3.bf16.msra.mxu1 %v3612_v35 }
 0x1f9   :  { %2467 = vmatpush1.bf16.msra.mxu0 %v3558_v15 }
 0x1fa   :  { %2468 = vmatprep.subr.bf16.mxu0 %v3563_v55 }
 0x1fd   :  { %2469 = vmatpush1.bf16.msra.mxu0 %v3561_v44 }
 0x1fe   :  { %2470 = vmatprep.subr.bf16.mxu0 %v3566_v45 }
 0x201   :  { %2471 = vmatpush1.bf16.msra.mxu0 %v3564_v48 }
 0x202   :  { %2472 = vmatprep.subr.bf16.mxu0 %v3569_v49 }
 0x205   :  { %2473 = vmatpush1.bf16.msra.mxu0 %v3567_v50 }
 0x206   :  { %2474 = vmatprep.subr.bf16.mxu0 %v3572_v51 }
 0x209   :  { %2475 = vmatpush1.bf16.msra.mxu0 %v3570_v52 }
 0x20a   :  { %2476 = vmatprep.subr.bf16.mxu0 %v3575_v53 }
 0x20d   :  { %2477 = vmatpush1.bf16.msra.mxu0 %v3573_v54 }
 0x20e   :  { %2478 = vmatprep.subr.bf16.mxu0 %v3578_v56 }
 0x211   :  { %2479 = vmatpush1.bf16.msra.mxu0 %v3576_v57 }
 0x212   :  { %2480 = vmatprep.subr.bf16.mxu0 %v3581_v58 }
 0x215   :  { %2481 = vmatpush1.bf16.msra.mxu0 %v3579_v59 }
 0x216   :  { %2482 = vmatprep.subr.bf16.mxu0 %v3584_v60 }
 0x219   :  { %2483 = vmatpush1.bf16.msra.mxu0 %v3582_v61 }
 0x21a   :  { %2484 = vmatprep.subr.bf16.mxu0 %v3587_v62 }
 0x21d   :  { %2485 = vmatpush1.bf16.msra.mxu0 %v3585_v63 }
 0x21e   :  { %2486 = vmatprep.subr.bf16.mxu0 %v3590_v0 }
 0x221   :  { %2487 = vmatpush1.bf16.msra.mxu0 %v3588_v1 }
 0x222   :  { %2488 = vmatprep.subr.bf16.mxu0 %v3593_v2 }
 0x225   :  { %2489 = vmatpush1.bf16.msra.mxu0 %v3591_v3 }
 0x226   :  { %2490 = vmatprep.subr.bf16.mxu0 %v3596_v8 }
 0x229   :  { %2491 = vmatpush1.bf16.msra.mxu0 %v3594_v31 }
 0x260   :  { %v2000_v14 = vpop.f32.mrb[4].mxu1 }
 0x261   :  { %v3073_v16 = vadd.f32 %v2000_v14, %v376_v11  ;;  %v2002_v17 = vpop.f32.mrb[5].mxu1 }
 0x262   :  { %v3074_v18 = vadd.f32 %v2002_v17, %v380_v13  ;;  %v2004_v19 = vpop.f32.mrb[6].mxu1 }
 0x263   :  { %v3075_v20 = vadd.f32 %v2004_v19, %v376_v11  ;;  %v2006_v21 = vpop.f32.mrb[7].mxu1  ;;  %v2011_v23 = vmax.f32 %v3073_v16, 0.0 }
 0x264   :  { %v3076_v22 = vadd.f32 %v2006_v21, %v380_v13  ;;  %v2012_v26 = vmax.f32 %v3074_v18, 0.0 }
 0x265   :  { %v2015_v25 = vmax.f32 %v3075_v20, 0.0 }
 0x266   :  { %v2016_v27 = vmax.f32 %v3076_v22, 0.0 }
 0x267   :  { %v2019_v28 = vpack.c.bf16 %v2015_v25, %v2011_v23 }
 0x268   :  { %v2020_v29 = vpack.c.bf16 %v2016_v27, %v2012_v26 }
 0x26a   :  { %2492 = vmatprep.mubr.bf16.mxu0 %v2020_v29 }
 0x26b   :  { %2493 = vmatmul.mubr.bf16.vlgmr.msra.gmra.mrb[4].mxu0 %v2019_v28 }
 0x33e   :  { %v2494_v38 = vpop.f32.mrb[4].mxu0 }
 0x33f   :  { %v3077_v39 = vadd.f32 %v2494_v38, %v2090_v36  ;;  %v2496_v24 = vpop.f32.mrb[5].mxu0 }
 0x340   :  { %v3078_v40 = vadd.f32 %v2496_v24, %v2094_v37  ;;  %v2498_v41 = vpop.f32.mrb[6].mxu0 }
 0x341   :  { %v3079_v33 = vadd.f32 %v2498_v41, %v2090_v36  ;;  %v2500_v15 = vpop.f32.mrb[7].mxu0  ;;  %v2503_v42 = vmax.f32 %v3077_v39, 0.0 }
 0x342   :  { %v3080_v55 = vadd.f32 %v2500_v15, %v2094_v37  ;;  %v2504_v44 = vmax.f32 %v3078_v40, 0.0 }
 0x343   :  { %v2505_v43 = vmax.f32 %v3079_v33, 0.0 }
 0x344   :  { %v2506_v45 = vmax.f32 %v3080_v55, 0.0 }
 0x345   :  { %v2507_v46 = vpack.c.bf16 %v2505_v43, %v2503_v42 }
 0x346   :  { %v2508_v47 = vpack.c.bf16 %v2506_v45, %v2504_v44 }
 0x348   :  { %2676 = vmatprep.mubr.bf16.mxu1 %v2508_v47 }
 0x349   :  { %2677 = vmatmul.mubr.bf16.vlgmr.msra.gmra.mrb[8].mxu1 %v2507_v46 }
 0x41c   :  { %v3059_v5 = vpop.f32.mrb[8].mxu1 }
 0x41d   :  { %v3060_v7 = vpop.f32.mrb[9].mxu1 }
 0x41e   :  { %v3061_v48 = vadd.f32 %v3060_v7, %v3059_v5  ;;  %v3062_v49 = vpop.f32.mrb[10].mxu1 }
 0x41f   :  { %v3063_v50 = vpop.f32.mrb[11].mxu1 }
 0x420   :  { %v2679_v51 = vadd.f32 %v3061_v48, %v3026_v4  ;;  %v3064_v52 = vadd.f32 %v3063_v50, %v3062_v49 }
 0x422   :  { %2685 = vst [vmem:[#allocation10] sm:$0xff] %v2679_v51  ;;  %v2682_v53 = vadd.f32 %v3064_v52, %v3026_v4 }
 0x424   :  { %2686 = vst [vmem:[#allocation10 + $0x8] sm:$0xff] %v2682_v53 }
 0x425   :  { %3712 = shalt.err (!%p3709_p8)
}
 0x426   :  { %s3713_s13 = scalar_lea.hbm %s3920_s7, 256 }
 0x427   :  { %p3714_p9 = scmp.ne.s32.totalorder %s3920_s7, %s3713_s13  ;;  %p3717_p10 = scmp.lt.u32.totalorder %s3713_s13, %s3920_s7 }
 0x429   :  { %p3719_p11 = pnand %p3717_p10, %p3714_p9 }
 0x42b   :  { %3722 = shalt.err (!%p3719_p11)
}
 0x42c   :  { %2698 = dma.vmem_to_hbm [thread:$0]  %s2693_s10, 256, %s3920_s7, [#allocation4], %s3738_s0, %s3738_s0, %s3739_s15  }
 0x42d   :  { %3729 = dma.done.wait [#allocation4], 256  }
 0x42e   :  { %3730 = vsyncadd [#allocation4], 4294967040 }
 0x42f   :  { %2702 = vsyncpa [#allocation3], 1 }
 0x430   :  { %2703 = vsyncpa [#allocation6], 1 }
 0x431   :  { %2704 = vsyncpa [#allocation9], 1 }
 0x432   :  { %2705 = vsyncpa [#allocation4], 1 }

</bundles_post_ra>
